<compile_context>
chip_gen: v6e
topology: v6e:2x2x1
jax: 0.10.0
libtpu: 0.0.40
codegen_flags: <defaults>
</compile_context>

<pallas_src>
import math
import jax
import jax.numpy as jnp
from jax import lax
from jax.experimental import pallas as pl
from jax.experimental.pallas import tpu as pltpu

_LOG2PI = math.log(2.0 * math.pi)
_NEG_INF = -1e15  # large sentinel; valid DP path sums stay far from this magnitude


# ------------------------------------------------------------------
# helpers
# ------------------------------------------------------------------
def _round_up(n, m):
    return ((n + m - 1) // m) * m


def _default_max_tile():
    """Generation-aware time-tile cap: 1024 on 128-MiB-VMEM parts (v5e/v6e), 512 otherwise."""
    try:
        info = pltpu.get_tpu_info()
        vmem = getattr(info, "vmem_capacity_bytes", None)
        if vmem is None:
            vmem = getattr(info, "vmem_bytes", None)
        if vmem is not None and int(vmem) >= (100 << 20):
            return 1024
    except Exception:
        pass
    return 512


def _time_tiling(t, max_tile):
    """Pick (tile, padded_len): lane-aligned, never collapses to 128 for long sequences;
    the sequence is padded up to a multiple of the chosen tile."""
    tp = _round_up(max(int(t), 1), 128)
    if tp <= max_tile:
        return tp, tp
    tile = max_tile
    while tile > 256 and _round_up(tp, tile) - tp > max(tp // 4, tile // 2):
        tile -= 128
    return tile, _round_up(tp, tile)


def _pad_last(x, tp):
    t = x.shape[-1]
    if t == tp:
        return x
    pad = [(0, 0)] * (x.ndim - 1) + [(0, tp - t)]
    return jnp.pad(x, pad)


def sequence_mask(lengths, max_len):
    return (jnp.arange(max_len)[None, :] < lengths[:, None]).astype(jnp.float32)


def _cp(n_grid_dims, vmem_need_bytes):
    """CompilerParams with explicit scoped-VMEM limit sized from the real footprint."""
    limit = int(min(max(2 * int(vmem_need_bytes) + (4 << 20), 32 << 20), 64 << 20))
    return pltpu.CompilerParams(
        dimension_semantics=("parallel",) * n_grid_dims,
        vmem_limit_bytes=limit)


# ------------------------------------------------------------------
# Kernel 1: fused two-layer pointwise block
#   h = relu(W1 @ (x*m) + b1) * m ;  y = (W2 @ h + b2) * m
# ------------------------------------------------------------------
def _mlp2_body(x_ref, m_ref, w1_ref, b1_ref, w2_ref, b2_ref):
    m = m_ref[...]                                     # (1, T) f32
    xm = x_ref[...] * m.astype(jnp.bfloat16)           # bf16 MXU operand
    h = jnp.dot(w1_ref[...], xm, preferred_element_type=jnp.float32) + b1_ref[...]
    h = jnp.maximum(h, 0.0) * m                        # (C1, T) f32
    y = jnp.dot(w2_ref[...], h.astype(jnp.bfloat16),
                preferred_element_type=jnp.float32) + b2_ref[...]
    return h, y * m


def _mlp2_kernel(x_ref, m_ref, w1_ref, b1_ref, w2_ref, b2_ref, y_ref):
    _, y = _mlp2_body(x_ref, m_ref, w1_ref, b1_ref, w2_ref, b2_ref)
    y_ref[...] = y.astype(y_ref.dtype)


def _mlp2_hidden_kernel(x_ref, m_ref, w1_ref, b1_ref, w2_ref, b2_ref, h_ref, y_ref):
    h, y = _mlp2_body(x_ref, m_ref, w1_ref, b1_ref, w2_ref, b2_ref)
    h_ref[...] = h.astype(h_ref.dtype)
    y_ref[...] = y.astype(y_ref.dtype)


def fused_mlp2(x16, mask32, w1, b1, w2, b2, *, tile, emit_hidden=False):
    """x16: (B, Cin, Tp) bf16 already padded; mask32: (B, 1, Tp) f32. Output stays padded."""
    B, Cin, Tp = x16.shape
    C1, C2 = w1.shape[0], w2.shape[0]
    grid = (B, Tp // tile)
    in_specs = [
        pl.BlockSpec((None, Cin, tile), lambda b, t: (b, 0, t)),
        pl.BlockSpec((None, 1, tile), lambda b, t: (b, 0, t)),
        pl.BlockSpec((C1, Cin), lambda b, t: (0, 0)),
        pl.BlockSpec((C1, 1), lambda b, t: (0, 0)),
        pl.BlockSpec((C2, C1), lambda b, t: (0, 0)),
        pl.BlockSpec((C2, 1), lambda b, t: (0, 0)),
    ]
    args = (x16, mask32,
            w1.astype(jnp.bfloat16), b1.reshape(C1, 1).astype(jnp.float32),
            w2.astype(jnp.bfloat16), b2.reshape(C2, 1).astype(jnp.float32))
    w_bytes = (C1 * Cin + C2 * C1) * 2 + (C1 + C2) * 4
    blk_bytes = tile * (Cin * 2 + 4 + C2 * 4 + (C1 * 2 if emit_hidden else 0))
    cp = _cp(2, blk_bytes + w_bytes)
    if emit_hidden:
        return pl.pallas_call(
            _mlp2_hidden_kernel,
            out_shape=(jax.ShapeDtypeStruct((B, C1, Tp), jnp.bfloat16),
                       jax.ShapeDtypeStruct((B, C2, Tp), jnp.float32)),
            grid=grid, in_specs=in_specs,
            out_specs=(pl.BlockSpec((None, C1, tile), lambda b, t: (b, 0, t)),
                       pl.BlockSpec((None, C2, tile), lambda b, t: (b, 0, t))),
            compiler_params=cp,
        )(*args)
    return pl.pallas_call(
        _mlp2_kernel,
        out_shape=jax.ShapeDtypeStruct((B, C2, Tp), jnp.float32),
        grid=grid, in_specs=in_specs,
        out_specs=pl.BlockSpec((None, C2, tile), lambda b, t: (b, 0, t)),
        compiler_params=cp,
    )(*args)


# ------------------------------------------------------------------
# Kernel 2: fused residual-coupling (flow) layer, residual add in-kernel
#   x0, x1 = split(z); m = (W2 @ relu(W1@(x0*mask)+b1)*mask + b2)*mask
#   out = [x0 ; (x1 + m)*mask]
# ------------------------------------------------------------------
def _flow_kernel(z_ref, m_ref, w1_ref, b1_ref, w2_ref, b2_ref, o_ref):
    half = w1_ref.shape[1]
    m = m_ref[...]                                     # (1, T) f32
    m16 = m.astype(jnp.bfloat16)
    x0 = z_ref[pl.ds(0, half), :]                      # bf16 pass-through half
    x1 = z_ref[pl.ds(half, half), :].astype(jnp.float32)
    h = jnp.dot(w1_ref[...], x0 * m16, preferred_element_type=jnp.float32) + b1_ref[...]
    h = jnp.maximum(h, 0.0) * m
    sh = jnp.dot(w2_ref[...], h.astype(jnp.bfloat16),
                 preferred_element_type=jnp.float32) + b2_ref[...]
    x1n = (x1 + sh * m) * m
    o_ref[pl.ds(0, half), :] = x0
    o_ref[pl.ds(half, half), :] = x1n.astype(o_ref.dtype)


def fused_flow_layer(z16, mask32, layer, *, tile):
    B, C, Tp = z16.shape
    half = C // 2
    Hm = layer["pre_w"].shape[0]
    w_bytes = 2 * Hm * half * 2 + (Hm + half) * 4
    blk_bytes = tile * (C * 2 + 4 + C * 2)
    return pl.pallas_call(
        _flow_kernel,
        out_shape=jax.ShapeDtypeStruct((B, C, Tp), jnp.bfloat16),
        grid=(B, Tp // tile),
        in_specs=[
            pl.BlockSpec((None, C, tile), lambda b, t: (b, 0, t)),
            pl.BlockSpec((None, 1, tile), lambda b, t: (b, 0, t)),
            pl.BlockSpec((Hm, half), lambda b, t: (0, 0)),
            pl.BlockSpec((Hm, 1), lambda b, t: (0, 0)),
            pl.BlockSpec((half, Hm), lambda b, t: (0, 0)),
            pl.BlockSpec((half, 1), lambda b, t: (0, 0)),
        ],
        out_specs=pl.BlockSpec((None, C, tile), lambda b, t: (b, 0, t)),
        compiler_params=_cp(2, blk_bytes + w_bytes),
    )(z16, mask32,
      layer["pre_w"].astype(jnp.bfloat16),
      layer["pre_b"].reshape(Hm, 1).astype(jnp.float32),
      layer["post_w"].astype(jnp.bfloat16),
      layer["post_b"].reshape(half, 1).astype(jnp.float32))


# ------------------------------------------------------------------
# Kernel 3: fused duration predictor (final 1-row projection as VPU mul+reduce)
# ------------------------------------------------------------------
def _dp_kernel(x_ref, m_ref, w1_ref, b1_ref, w2_ref, b2_ref, w3_ref, b3_ref, y_ref):
    m = m_ref[...]
    m16 = m.astype(jnp.bfloat16)
    x = x_ref[...] * m16
    h = jnp.dot(w1_ref[...], x, preferred_element_type=jnp.float32) + b1_ref[...]
    h = jnp.maximum(h, 0.0) * m
    h = jnp.dot(w2_ref[...], h.astype(jnp.bfloat16),
                preferred_element_type=jnp.float32) + b2_ref[...]
    h = jnp.maximum(h, 0.0) * m
    logw = jnp.sum(w3_ref[...] * h, axis=0, keepdims=True) + b3_ref[...]
    y_ref[...] = (logw * m).astype(y_ref.dtype)


def fused_duration_predictor(x16, mask32, p, *, tile):
    B, Cin, Tp = x16.shape
    F1, F2 = p["c1_w"].shape[0], p["c2_w"].shape[0]
    w_bytes = (F1 * Cin + F2 * F1) * 2 + (F1 + 2 * F2 + 1) * 4
    blk_bytes = tile * (Cin * 2 + 4 + 4)
    return pl.pallas_call(
        _dp_kernel,
        out_shape=jax.ShapeDtypeStruct((B, 1, Tp), jnp.float32),
        grid=(B, Tp // tile),
        in_specs=[
            pl.BlockSpec((None, Cin, tile), lambda b, t: (b, 0, t)),
            pl.BlockSpec((None, 1, tile), lambda b, t: (b, 0, t)),
            pl.BlockSpec((F1, Cin), lambda b, t: (0, 0)),
            pl.BlockSpec((F1, 1), lambda b, t: (0, 0)),
            pl.BlockSpec((F2, F1), lambda b, t: (0, 0)),
            pl.BlockSpec((F2, 1), lambda b, t: (0, 0)),
            pl.BlockSpec((F2, 1), lambda b, t: (0, 0)),
            pl.BlockSpec((1, 1), lambda b, t: (0, 0)),
        ],
        out_specs=pl.BlockSpec((None, 1, tile), lambda b, t: (b, 0, t)),
        compiler_params=_cp(2, blk_bytes + w_bytes),
    )(x16, mask32,
      p["c1_w"].astype(jnp.bfloat16), p["c1_b"].reshape(F1, 1).astype(jnp.float32),
      p["c2_w"].astype(jnp.bfloat16), p["c2_b"].reshape(F2, 1).astype(jnp.float32),
      p["proj_w"].reshape(F2, 1).astype(jnp.float32),
      p["proj_b"].reshape(1, 1).astype(jnp.float32))


# ------------------------------------------------------------------
# Kernel 4: fused decoder (simplified HiFi-GAN), tanh in-kernel
# TODO(synk): real HiFi-GAN has transposed convs + multi-receptive-field blocks;
#             reduced here to fused pointwise layers + frame->sample reshape.
# ------------------------------------------------------------------
def _dec_kernel(z_ref, w1_ref, b1_ref, w2_ref, b2_ref, y_ref):
    z = z_ref[...]                                     # bf16
    h = jnp.dot(w1_ref[...], z, preferred_element_type=jnp.float32) + b1_ref[...]
    h = jnp.where(h >= 0, h, 0.1 * h)
    y = jnp.dot(w2_ref[...], h.astype(jnp.bfloat16),
                preferred_element_type=jnp.float32) + b2_ref[...]
    y_ref[...] = jnp.tanh(y).astype(y_ref.dtype)       # EUP slot, free vs. an extra HBM pass


def fused_decoder(z16, p, hop, max_tile):
    B, C, S = z16.shape
    U = p["pre_w"].shape[0]
    tile, Sp = _time_tiling(S, max_tile)
    zp = _pad_last(z16, Sp)
    w_bytes = (U * C + hop * U) * 2 + (U + hop) * 4
    blk_bytes = tile * (C * 2 + hop * 4)
    frames = pl.pallas_call(
        _dec_kernel,
        out_shape=jax.ShapeDtypeStruct((B, hop, Sp), jnp.float32),
        grid=(B, Sp // tile),
        in_specs=[
            pl.BlockSpec((None, C, tile), lambda b, t: (b, 0, t)),
            pl.BlockSpec((U, C), lambda b, t: (0, 0)),
            pl.BlockSpec((U, 1), lambda b, t: (0, 0)),
            pl.BlockSpec((hop, U), lambda b, t: (0, 0)),
            pl.BlockSpec((hop, 1), lambda b, t: (0, 0)),
        ],
        out_specs=pl.BlockSpec((None, hop, tile), lambda b, t: (b, 0, t)),
        compiler_params=_cp(2, blk_bytes + w_bytes),
    )(zp,
      p["pre_w"].astype(jnp.bfloat16), p["pre_b"].reshape(U, 1).astype(jnp.float32),
      p["out_w"].astype(jnp.bfloat16), p["out_b"].reshape(hop, 1).astype(jnp.float32))
    frames = frames[:, :, :S]                          # final-output slice only
    # TODO(synk): emit sample-major layout straight from the kernel out_spec instead
    #             of this JAX-side transpose/reshape.
    return jnp.transpose(frames, (0, 2, 1)).reshape(B, 1, S * hop)


# ------------------------------------------------------------------
# Kernel 5: fused MAS block (the torch.no_grad() section)
#   * neg_cent via ONE K=2C f32 dot_general (nc2+nc3 fused)
#   * monotonic DP forward (prev row carried in registers, dynamic t_y bound)
#   * backtrack overwrites DP rows in place with the one-hot attention rows
#     -> a single (Typ, Txp) f32 scratch; neg_cent / attn never touch HBM
#   * emits durations w = attn.sum(y) and expanded priors [m_p; logs_p] @ attn^T
# TODO(synk): store came-from-left bits during fwd to drop the 2 masked reductions
#             per backtrack step; split the neg_cent matmul across a 2nd grid axis
#             to keep both v7x TensorCores busy when B is small.
# TODO(synk): training would need the prior-expansion matmul outside this (non-diff)
#             kernel or a custom VJP so gradients flow into m_p / logs_p.
# ------------------------------------------------------------------
def _mas_fused_kernel(xlen_ref, ylen_ref, zp_ref, stk_ref, w_ref, exp_ref, scr):
    b = pl.program_id(0)
    t_x = xlen_ref[b]
    t_y = ylen_ref[b]
    C = zp_ref.shape[0]
    Typ = zp_ref.shape[1]
    Txp = stk_ref.shape[1]

    zp = zp_ref[...].astype(jnp.float32)               # (C, Typ)
    stk = stk_ref[...]                                  # (2C, Txp) f32 = [m_p; logs_p]
    mp, logsp = stk[:C, :], stk[C:, :]

    # fused negative cross-entropy (kept f32 on the MXU for alignment parity)
    sprs = jnp.exp(-2.0 * logsp)
    nc1 = jnp.sum(-0.5 * _LOG2PI - logsp, axis=0, keepdims=True)     # (1, Txp)
    nc4 = jnp.sum(-0.5 * mp * mp * sprs, axis=0, keepdims=True)      # (1, Txp)
    lhs = jnp.concatenate([-0.5 * zp * zp, zp], axis=0)              # (2C, Typ)
    rhs = jnp.concatenate([sprs, mp * sprs], axis=0)                 # (2C, Txp)
    nc23 = lax.dot_general(lhs, rhs, (((0,), (0,)), ((), ())),
                           preferred_element_type=jnp.float32)       # (Typ, Txp)
    scr[...] = nc23 + nc1 + nc4

    lane = lax.broadcasted_iota(jnp.int32, (1, Txp), 1)
    zero_row = jnp.zeros((1, Txp), jnp.float32)

    # forward DP: previous row carried in registers, dynamic per-utterance bound
    def fwd_body(y, prev):
        neg_row = scr[pl.ds(y, 1), :]
        v_cur = jnp.where(lane == y, _NEG_INF, prev)
        shifted = pltpu.roll(prev, shift=1, axis=1)       # shifted[x] = prev[x-1]
        v_prev = jnp.where(lane == 0,
                           jnp.where(y == 0, 0.0, _NEG_INF), shifted)
        row = jnp.maximum(v_cur, v_prev) + neg_row
        valid = ((lane >= jnp.maximum(0, t_x + y - t_y)) &
                 (lane < jnp.minimum(t_x, y + 1)))
        row = jnp.where(valid, row, _NEG_INF)
        scr[pl.ds(y, 1), :] = row
        return row

    prev0 = jnp.full((1, Txp), _NEG_INF, dtype=jnp.float32)
    lax.fori_loop(0, t_y, fwd_body, prev0)

    # rows beyond t_y become zero attention rows (scr is reused in place as attn)
    def zero_body(i, c):
        scr[pl.ds(t_y + i, 1), :] = zero_row
        return c

    lax.fori_loop(0, Typ - t_y, zero_body, 0)

    # backtrack: overwrite DP row y with its one-hot attention row (row y-1 still
    # holds untouched DP values when read). Tie-break matches the cython reference.
    def bwd_body(i, index):
        y = t_y - 1 - i
        prow = scr[pl.ds(jnp.maximum(y - 1, 0), 1), :]
        v_at = jnp.sum(jnp.where(lane == index, prow, 0.0), axis=1, keepdims=True)
        v_lf = jnp.sum(jnp.where(lane == index - 1, prow, 0.0), axis=1, keepdims=True)
        scr[pl.ds(y, 1), :] = (lane == index).astype(jnp.float32)
        go_left = (index != 0) & ((index == y) | (v_at < v_lf))
        return jnp.where(go_left, index - 1, index)

    idx0 = jnp.full((1, 1), t_x - 1, dtype=jnp.int32)
    lax.fori_loop(0, t_y, bwd_body, idx0)

    attn = scr[...]                                               # (Typ, Txp) one-hot path
    w_ref[...] = jnp.sum(attn, axis=0, keepdims=True)             # durations (1, Txp)
    exp_ref[...] = lax.dot_general(stk, attn, (((1,), (1,)), ((), ())),
                                   preferred_element_type=jnp.float32)   # (2C, Typ)


def mas_align(z_p16, stats_p, x_lengths, y_lengths):
    """z_p16: (B, C, Typ) bf16, stats_p = [m_p; logs_p]: (B, 2C, Txp) f32 (both padded)."""
    B, C, Typ = z_p16.shape
    Txp = stats_p.shape[2]
    scr_bytes = Typ * Txp * 4
    blk_bytes = C * Typ * 2 + 2 * C * Txp * 4 + Txp * 4 + 2 * C * Typ * 4

    grid_spec = pltpu.PrefetchScalarGridSpec(
        num_scalar_prefetch=2,
        grid=(B,),
        in_specs=[
            pl.BlockSpec((None, C, Typ), lambda b, xl, yl: (b, 0, 0)),
            pl.BlockSpec((None, 2 * C, Txp), lambda b, xl, yl: (b, 0, 0)),
        ],
        out_specs=[
            pl.BlockSpec((None, 1, Txp), lambda b, xl, yl: (b, 0, 0)),
            pl.BlockSpec((None, 2 * C, Typ), lambda b, xl, yl: (b, 0, 0)),
        ],
        scratch_shapes=[pltpu.VMEM((Typ, Txp), jnp.float32)],   # neg_cent -> DP -> attn (in place)
    )
    w, expanded = pl.pallas_call(
        _mas_fused_kernel,
        out_shape=(jax.ShapeDtypeStruct((B, 1, Txp), jnp.float32),
                   jax.ShapeDtypeStruct((B, 2 * C, Typ), jnp.float32)),
        grid_spec=grid_spec,
        compiler_params=_cp(1, scr_bytes + blk_bytes),
    )(x_lengths.astype(jnp.int32), y_lengths.astype(jnp.int32),
      z_p16, stats_p.astype(jnp.float32))
    return w, expanded


# ------------------------------------------------------------------
# glue (plain JAX)
# ------------------------------------------------------------------
def rand_slice_segments(z, y_lengths, segment_size, key, max_len):
    B = z.shape[0]
    max_start = jnp.clip(jnp.minimum(y_lengths, max_len) - segment_size,
                         0, max_len - segment_size)
    ids = jnp.minimum((jax.random.uniform(key, (B,)) *
                       (max_start + 1).astype(jnp.float32)).astype(jnp.int32), max_start)

    def take(zb, s):
        return lax.dynamic_slice(zb, (0, s), (zb.shape[0], segment_size))

    return jax.vmap(take)(z, ids), ids


# ------------------------------------------------------------------
# Full Vits.forward
# ------------------------------------------------------------------
def vits_forward(params, cfg, x_tok, x_lengths, y, y_lengths, key):
    k_post, k_slice = jax.random.split(key)
    H, C = cfg["H"], cfg["C"]
    B, Tx = x_tok.shape
    Ty = y.shape[2]

    max_tile = _default_max_tile()
    tile_x, Txp = _time_tiling(Tx, max_tile)
    tile_y, Typ = _time_tiling(Ty, max_tile)

    # masks at the padded length (zero tails) — everything stays padded until the end
    x_mask = sequence_mask(x_lengths, Txp)[:, None, :]            # (B,1,Txp) f32
    y_mask = sequence_mask(y_lengths, Typ)[:, None, :]            # (B,1,Typ) f32

    # ---- text encoder (embedding gather in JAX; fused pointwise stack in Pallas) ----
    # TODO(synk): full transformer encoder reduced to one fused pointwise block.
    emb = params["enc_p"]["emb"][x_tok] * math.sqrt(H)            # (B,Tx,H) f32
    x_in = _pad_last(jnp.transpose(emb, (0, 2, 1)), Txp).astype(jnp.bfloat16)
    x_h, stats_p = fused_mlp2(x_in, x_mask,
                              params["enc_p"]["enc_w"], params["enc_p"]["enc_b"],
                              params["enc_p"]["proj_w"], params["enc_p"]["proj_b"],
                              tile=tile_x, emit_hidden=True)
    # x_h: (B,H,Txp) bf16 ; stats_p = [m_p; logs_p]: (B,2C,Txp) f32

    # ---- posterior encoder ----
    # TODO(synk): WaveNet residual stack reduced to one fused pointwise block.
    y_in = _pad_last(y, Typ).astype(jnp.bfloat16)
    stats_q = fused_mlp2(y_in, y_mask,
                         params["enc_q"]["pre_w"], params["enc_q"]["pre_b"],
                         params["enc_q"]["proj_w"], params["enc_q"]["proj_b"],
                         tile=tile_y)
    m_q, logs_q = jnp.split(stats_q, 2, axis=1)                   # (B,C,Typ) f32
    noise = jax.random.normal(k_post, m_q.shape, jnp.float32)
    z = (m_q + noise * jnp.exp(logs_q)) * y_mask                  # (B,C,Typ) f32

    # ---- flow (mean-only coupling layers; residual fused in-kernel) ----
    # TODO(synk): coupling-layer WaveNet reduced to fused pre/post pointwise layers.
    z_p16 = z.astype(jnp.bfloat16)
    for layer in params["flow"]["flows"]:
        z_p16 = fused_flow_layer(z_p16, y_mask, layer, tile=tile_y)
        # TODO(synk): fold this channel flip into the next layer's weight permutation.
        z_p16 = z_p16[:, ::-1, :]

    # ---- fused no_grad alignment: neg_cent + monotonic DP + durations + prior expansion ----
    w, expanded = mas_align(z_p16, stats_p, x_lengths, y_lengths)
    m_p_e = expanded[:, :C, :Ty]
    logs_p_e = expanded[:, C:, :Ty]

    logw_ = jnp.log(w + 1e-6) * x_mask                            # (B,1,Txp)
    logw = fused_duration_predictor(x_h, x_mask, params["dp"], tile=tile_x)
    l_length = jnp.sum((logw - logw_) ** 2, axis=(1, 2)) / jnp.sum(x_mask)

    z_slice, ids_slice = rand_slice_segments(z, y_lengths, cfg["segment_size"],
                                             k_slice, Ty)
    o = fused_decoder(z_slice.astype(jnp.bfloat16), params["dec"], cfg["hop"], max_tile)

    z_p = z_p16[:, :, :Ty].astype(jnp.float32)
    return (o, l_length, ids_slice,
            y_mask[:, :, :Ty],
            (z_p, m_p_e, logs_p_e, logs_q[:, :, :Ty]))


# ------------------------------------------------------------------
# Deterministic parameter init
# ------------------------------------------------------------------
def init_params(key, cfg):
    H, C, S, F, U = cfg["H"], cfg["C"], cfg["S"], cfg["F"], cfg["U"]
    keys = iter(jax.random.split(key, 32))

    def w(shape, scale=0.1):
        return (jax.random.normal(next(keys), shape) * scale).astype(jnp.float32)

    def b(n):
        return jnp.zeros((n,), jnp.float32)

    params = {
        "enc_p": {"emb": w((cfg["n_vocab"], H), 0.5),
                  "enc_w": w((H, H)), "enc_b": b(H),
                  "proj_w": w((2 * C, H)), "proj_b": b(2 * C)},
        "enc_q": {"pre_w": w((H, S)), "pre_b": b(H),
                  "proj_w": w((2 * C, H)), "proj_b": b(2 * C)},
        "flow": {"flows": [
            {"pre_w": w((H, C // 2)), "pre_b": b(H),
             "post_w": w((C // 2, H)), "post_b": b(C // 2)}
            for _ in range(cfg["n_flows"])]},
        "dp": {"c1_w": w((F, H)), "c1_b": b(F),
               "c2_w": w((F, F)), "c2_b": b(F),
               "proj_w": w((1, F)), "proj_b": b(1)},
        "dec": {"pre_w": w((U, C)), "pre_b": b(U),
                "out_w": w((cfg["hop"], U)), "out_b": b(cfg["hop"])},
    }
    return params


# ------------------------------------------------------------------
if __name__ == "__main__":
    cfg = dict(n_vocab=40, H=32, C=32, S=16, F=16, U=16,
               n_flows=2, segment_size=8, hop=4)

    key = jax.random.PRNGKey(0)
    k_par, k_x, k_y, k_fwd = jax.random.split(key, 4)

    B, Tx, Ty = 2, 8, 16
    params = init_params(k_par, cfg)

    x_tok = jax.random.randint(k_x, (B, Tx), 0, cfg["n_vocab"])
    x_lengths = jnp.array([8, 6], jnp.int32)
    y = jax.random.normal(k_y, (B, cfg["S"], Ty), jnp.float32)
    y_lengths = jnp.array([16, 12], jnp.int32)

    fwd = jax.jit(lambda p, xt, xl, yy, yl: vits_forward(p, cfg, xt, xl, yy, yl, k_fwd))
    o, l_length, ids_slice, y_mask, (z_p, m_p_e, logs_p_e, logs_q) = fwd(
        params, x_tok, x_lengths, y, y_lengths)

    jax.block_until_ready((o, l_length, ids_slice, y_mask, z_p, m_p_e, logs_p_e, logs_q))

    assert o.shape == (B, 1, cfg["segment_size"] * cfg["hop"])
    assert l_length.shape == (B,)
    assert z_p.shape == (B, cfg["C"], Ty)
    assert m_p_e.shape == (B, cfg["C"], Ty)
    assert logs_p_e.shape == (B, cfg["C"], Ty)
    assert y_mask.shape == (B, 1, Ty)
    print("KERNEL_OK")
</pallas_src>

<mosaic_0001>
module attributes {stable_mosaic.version = 11 : i64} {
  func.func @_mlp2_kernel(%arg0: i32, %arg1: i32, %arg2: memref<1x16x128xbf16, #tpu.memory_space<vmem>>, %arg3: memref<1x1x128xf32, #tpu.memory_space<vmem>>, %arg4: memref<32x16xbf16, #tpu.memory_space<vmem>>, %arg5: memref<32x1xf32, #tpu.memory_space<vmem>>, %arg6: memref<64x32xbf16, #tpu.memory_space<vmem>>, %arg7: memref<64x1xf32, #tpu.memory_space<vmem>>, %arg8: memref<1x64x128xf32, #tpu.memory_space<vmem>>) attributes {dimension_semantics = [#tpu.dimension_semantics<parallel>, #tpu.dimension_semantics<parallel>], iteration_bounds = array<i64: 2, 1>, scalar_prefetch = 0 : i64, scratch_operands = 0 : i64, tpu.core_type = #tpu.core_type<tc>, window_params = [{transform_indices = @transform_0, window_bounds = array<i64: 1, 16, 128>}, {transform_indices = @transform_1, window_bounds = array<i64: 1, 1, 128>}, {pipeline_mode = #tpu.pipeline_mode<synchronous>, transform_indices = @transform_2, window_bounds = array<i64: 32, 16>}, {pipeline_mode = #tpu.pipeline_mode<synchronous>, transform_indices = @transform_3, window_bounds = array<i64: 32, 1>}, {pipeline_mode = #tpu.pipeline_mode<synchronous>, transform_indices = @transform_4, window_bounds = array<i64: 64, 32>}, {pipeline_mode = #tpu.pipeline_mode<synchronous>, transform_indices = @transform_5, window_bounds = array<i64: 64, 1>}, {transform_indices = @transform_6, window_bounds = array<i64: 1, 64, 128>}]} {
    %c0 = arith.constant 0 : index
    %c0_0 = arith.constant 0 : index
    %c0_1 = arith.constant 0 : index
    %0 = vector.load %arg3[%c0, %c0_0, %c0_1] : memref<1x1x128xf32, #tpu.memory_space<vmem>>, vector<1x1x128xf32>
    %1 = vector.shape_cast %0 : vector<1x1x128xf32> to vector<1x128xf32>
    %c0_2 = arith.constant 0 : index
    %c0_3 = arith.constant 0 : index
    %c0_4 = arith.constant 0 : index
    %2 = vector.load %arg2[%c0_2, %c0_3, %c0_4] : memref<1x16x128xbf16, #tpu.memory_space<vmem>>, vector<1x16x128xbf16>
    %3 = vector.shape_cast %2 : vector<1x16x128xbf16> to vector<16x128xbf16>
    %4 = arith.truncf %1 : vector<1x128xf32> to vector<1x128xbf16>
    %5 = vector.broadcast %4 : vector<1x128xbf16> to vector<16x128xbf16>
    %6 = arith.mulf %3, %5 : vector<16x128xbf16>
    %c0_5 = arith.constant 0 : index
    %c0_6 = arith.constant 0 : index
    %7 = vector.load %arg4[%c0_5, %c0_6] : memref<32x16xbf16, #tpu.memory_space<vmem>>, vector<32x16xbf16>
    %cst = arith.constant dense<0.000000e+00> : vector<32x128xf32>
    %8 = tpu.matmul %7, %6, %cst {dimension_numbers = #tpu.dot_dimension_numbers<[1], [0], [0], [1], [0, 0, 1, 1], [], []>} : vector<32x16xbf16>, vector<16x128xbf16>, vector<32x128xf32> -> vector<32x128xf32>
    %c0_7 = arith.constant 0 : index
    %c0_8 = arith.constant 0 : index
    %9 = vector.load %arg5[%c0_7, %c0_8] : memref<32x1xf32, #tpu.memory_space<vmem>>, vector<32x1xf32>
    %10 = vector.broadcast %9 : vector<32x1xf32> to vector<32x128xf32>
    %11 = arith.addf %8, %10 : vector<32x128xf32>
    %cst_9 = arith.constant 0.000000e+00 : f32
    %12 = vector.broadcast %cst_9 : f32 to vector<32x128xf32>
    %13 = arith.maximumf %11, %12 : vector<32x128xf32>
    %14 = vector.broadcast %1 : vector<1x128xf32> to vector<32x128xf32>
    %15 = arith.mulf %13, %14 : vector<32x128xf32>
    %c0_10 = arith.constant 0 : index
    %c0_11 = arith.constant 0 : index
    %16 = vector.load %arg6[%c0_10, %c0_11] : memref<64x32xbf16, #tpu.memory_space<vmem>>, vector<64x32xbf16>
    %17 = arith.truncf %15 : vector<32x128xf32> to vector<32x128xbf16>
    %cst_12 = arith.constant dense<0.000000e+00> : vector<64x128xf32>
    %18 = tpu.matmul %16, %17, %cst_12 {dimension_numbers = #tpu.dot_dimension_numbers<[1], [0], [0], [1], [0, 0, 1, 1], [], []>} : vector<64x32xbf16>, vector<32x128xbf16>, vector<64x128xf32> -> vector<64x128xf32>
    %c0_13 = arith.constant 0 : index
    %c0_14 = arith.constant 0 : index
    %19 = vector.load %arg7[%c0_13, %c0_14] : memref<64x1xf32, #tpu.memory_space<vmem>>, vector<64x1xf32>
    %20 = vector.broadcast %19 : vector<64x1xf32> to vector<64x128xf32>
    %21 = arith.addf %18, %20 : vector<64x128xf32>
    %22 = vector.broadcast %1 : vector<1x128xf32> to vector<64x128xf32>
    %23 = arith.mulf %21, %22 : vector<64x128xf32>
    %c0_15 = arith.constant 0 : index
    %c0_16 = arith.constant 0 : index
    %c0_17 = arith.constant 0 : index
    %24 = vector.load %arg8[%c0_15, %c0_16, %c0_17] : memref<1x64x128xf32, #tpu.memory_space<vmem>>, vector<1x64x128xf32>
    %25 = vector.shape_cast %24 : vector<1x64x128xf32> to vector<64x128xf32>
    %26 = vector.shape_cast %23 : vector<64x128xf32> to vector<1x64x128xf32>
    tpu.vector_store %arg8[%c0_15, %c0_16, %c0_17], %26 {strides = array<i32>} : memref<1x64x128xf32, #tpu.memory_space<vmem>>, vector<1x64x128xf32>,
    return
  }
  func.func @transform_0(%arg0: i32, %arg1: i32) -> (i32, i32, i32) {
    %c0_i32 = arith.constant 0 : i32
    %c0_i32_0 = arith.constant 0 : i32
    return %arg0, %c0_i32, %arg1 : i32, i32, i32
  }
  func.func @transform_1(%arg0: i32, %arg1: i32) -> (i32, i32, i32) {
    %c0_i32 = arith.constant 0 : i32
    %c0_i32_0 = arith.constant 0 : i32
    return %arg0, %c0_i32, %arg1 : i32, i32, i32
  }
  func.func @transform_2(%arg0: i32, %arg1: i32) -> (i32, i32) {
    %c0_i32 = arith.constant 0 : i32
    %c0_i32_0 = arith.constant 0 : i32
    %c0_i32_1 = arith.constant 0 : i32
    return %c0_i32, %c0_i32_0 : i32, i32
  }
  func.func @transform_3(%arg0: i32, %arg1: i32) -> (i32, i32) {
    %c0_i32 = arith.constant 0 : i32
    %c0_i32_0 = arith.constant 0 : i32
    %c0_i32_1 = arith.constant 0 : i32
    return %c0_i32, %c0_i32_0 : i32, i32
  }
  func.func @transform_4(%arg0: i32, %arg1: i32) -> (i32, i32) {
    %c0_i32 = arith.constant 0 : i32
    %c0_i32_0 = arith.constant 0 : i32
    %c0_i32_1 = arith.constant 0 : i32
    return %c0_i32, %c0_i32_0 : i32, i32
  }
  func.func @transform_5(%arg0: i32, %arg1: i32) -> (i32, i32) {
    %c0_i32 = arith.constant 0 : i32
    %c0_i32_0 = arith.constant 0 : i32
    %c0_i32_1 = arith.constant 0 : i32
    return %c0_i32, %c0_i32_0 : i32, i32
  }
  func.func @transform_6(%arg0: i32, %arg1: i32) -> (i32, i32, i32) {
    %c0_i32 = arith.constant 0 : i32
    %c0_i32_0 = arith.constant 0 : i32
    return %arg0, %c0_i32, %arg1 : i32, i32, i32
  }
}

module attributes {stable_mosaic.version = 11 : i64} {
  func.func @_dec_kernel(%arg0: i32, %arg1: i32, %arg2: memref<1x32x128xbf16, #tpu.memory_space<vmem>>, %arg3: memref<16x32xbf16, #tpu.memory_space<vmem>>, %arg4: memref<16x1xf32, #tpu.memory_space<vmem>>, %arg5: memref<4x16xbf16, #tpu.memory_space<vmem>>, %arg6: memref<4x1xf32, #tpu.memory_space<vmem>>, %arg7: memref<1x4x128xf32, #tpu.memory_space<vmem>>) attributes {dimension_semantics = [#tpu.dimension_semantics<parallel>, #tpu.dimension_semantics<parallel>], iteration_bounds = array<i64: 2, 1>, scalar_prefetch = 0 : i64, scratch_operands = 0 : i64, tpu.core_type = #tpu.core_type<tc>, window_params = [{transform_indices = @transform_0, window_bounds = array<i64: 1, 32, 128>}, {pipeline_mode = #tpu.pipeline_mode<synchronous>, transform_indices = @transform_1, window_bounds = array<i64: 16, 32>}, {pipeline_mode = #tpu.pipeline_mode<synchronous>, transform_indices = @transform_2, window_bounds = array<i64: 16, 1>}, {pipeline_mode = #tpu.pipeline_mode<synchronous>, transform_indices = @transform_3, window_bounds = array<i64: 4, 16>}, {pipeline_mode = #tpu.pipeline_mode<synchronous>, transform_indices = @transform_4, window_bounds = array<i64: 4, 1>}, {transform_indices = @transform_5, window_bounds = array<i64: 1, 4, 128>}]} {
    %c0 = arith.constant 0 : index
    %c0_0 = arith.constant 0 : index
    %c0_1 = arith.constant 0 : index
    %0 = vector.load %arg2[%c0, %c0_0, %c0_1] : memref<1x32x128xbf16, #tpu.memory_space<vmem>>, vector<1x32x128xbf16>
    %1 = vector.shape_cast %0 : vector<1x32x128xbf16> to vector<32x128xbf16>
    %c0_2 = arith.constant 0 : index
    %c0_3 = arith.constant 0 : index
    %2 = vector.load %arg3[%c0_2, %c0_3] : memref<16x32xbf16, #tpu.memory_space<vmem>>, vector<16x32xbf16>
    %cst = arith.constant dense<0.000000e+00> : vector<16x128xf32>
    %3 = tpu.matmul %2, %1, %cst {dimension_numbers = #tpu.dot_dimension_numbers<[1], [0], [0], [1], [0, 0, 1, 1], [], []>} : vector<16x32xbf16>, vector<32x128xbf16>, vector<16x128xf32> -> vector<16x128xf32>
    %c0_4 = arith.constant 0 : index
    %c0_5 = arith.constant 0 : index
    %4 = vector.load %arg4[%c0_4, %c0_5] : memref<16x1xf32, #tpu.memory_space<vmem>>, vector<16x1xf32>
    %5 = vector.broadcast %4 : vector<16x1xf32> to vector<16x128xf32>
    %6 = arith.addf %3, %5 : vector<16x128xf32>
    %cst_6 = arith.constant 0.000000e+00 : f32
    %7 = vector.broadcast %cst_6 : f32 to vector<16x128xf32>
    %8 = arith.cmpf oge, %6, %7 : vector<16x128xf32>
    %cst_7 = arith.constant 1.000000e-01 : f32
    %9 = vector.broadcast %cst_7 : f32 to vector<16x128xf32>
    %10 = arith.mulf %9, %6 : vector<16x128xf32>
    %11 = arith.select %8, %6, %10 : vector<16x128xi1>, vector<16x128xf32>
    %c0_8 = arith.constant 0 : index
    %c0_9 = arith.constant 0 : index
    %12 = vector.load %arg5[%c0_8, %c0_9] : memref<4x16xbf16, #tpu.memory_space<vmem>>, vector<4x16xbf16>
    %13 = arith.truncf %11 : vector<16x128xf32> to vector<16x128xbf16>
    %cst_10 = arith.constant dense<0.000000e+00> : vector<4x128xf32>
    %14 = tpu.matmul %12, %13, %cst_10 {dimension_numbers = #tpu.dot_dimension_numbers<[1], [0], [0], [1], [0, 0, 1, 1], [], []>} : vector<4x16xbf16>, vector<16x128xbf16>, vector<4x128xf32> -> vector<4x128xf32>
    %c0_11 = arith.constant 0 : index
    %c0_12 = arith.constant 0 : index
    %15 = vector.load %arg6[%c0_11, %c0_12] : memref<4x1xf32, #tpu.memory_space<vmem>>, vector<4x1xf32>
    %16 = vector.broadcast %15 : vector<4x1xf32> to vector<4x128xf32>
    %17 = arith.addf %14, %16 : vector<4x128xf32>
    %18 = math.tanh %17 : vector<4x128xf32>
    %c0_13 = arith.constant 0 : index
    %c0_14 = arith.constant 0 : index
    %c0_15 = arith.constant 0 : index
    %19 = vector.load %arg7[%c0_13, %c0_14, %c0_15] : memref<1x4x128xf32, #tpu.memory_space<vmem>>, vector<1x4x128xf32>
    %20 = vector.shape_cast %19 : vector<1x4x128xf32> to vector<4x128xf32>
    %21 = vector.shape_cast %18 : vector<4x128xf32> to vector<1x4x128xf32>
    tpu.vector_store %arg7[%c0_13, %c0_14, %c0_15], %21 {strides = array<i32>} : memref<1x4x128xf32, #tpu.memory_space<vmem>>, vector<1x4x128xf32>,
    return
  }
  func.func @transform_0(%arg0: i32, %arg1: i32) -> (i32, i32, i32) {
    %c0_i32 = arith.constant 0 : i32
    %c0_i32_0 = arith.constant 0 : i32
    return %arg0, %c0_i32, %arg1 : i32, i32, i32
  }
  func.func @transform_1(%arg0: i32, %arg1: i32) -> (i32, i32) {
    %c0_i32 = arith.constant 0 : i32
    %c0_i32_0 = arith.constant 0 : i32
    %c0_i32_1 = arith.constant 0 : i32
    return %c0_i32, %c0_i32_0 : i32, i32
  }
  func.func @transform_2(%arg0: i32, %arg1: i32) -> (i32, i32) {
    %c0_i32 = arith.constant 0 : i32
    %c0_i32_0 = arith.constant 0 : i32
    %c0_i32_1 = arith.constant 0 : i32
    return %c0_i32, %c0_i32_0 : i32, i32
  }
  func.func @transform_3(%arg0: i32, %arg1: i32) -> (i32, i32) {
    %c0_i32 = arith.constant 0 : i32
    %c0_i32_0 = arith.constant 0 : i32
    %c0_i32_1 = arith.constant 0 : i32
    return %c0_i32, %c0_i32_0 : i32, i32
  }
  func.func @transform_4(%arg0: i32, %arg1: i32) -> (i32, i32) {
    %c0_i32 = arith.constant 0 : i32
    %c0_i32_0 = arith.constant 0 : i32
    %c0_i32_1 = arith.constant 0 : i32
    return %c0_i32, %c0_i32_0 : i32, i32
  }
  func.func @transform_5(%arg0: i32, %arg1: i32) -> (i32, i32, i32) {
    %c0_i32 = arith.constant 0 : i32
    %c0_i32_0 = arith.constant 0 : i32
    return %arg0, %c0_i32, %arg1 : i32, i32, i32
  }
}

module attributes {stable_mosaic.version = 11 : i64} {
  func.func @_mlp2_hidden_kernel(%arg0: i32, %arg1: i32, %arg2: memref<1x32x128xbf16, #tpu.memory_space<vmem>>, %arg3: memref<1x1x128xf32, #tpu.memory_space<vmem>>, %arg4: memref<32x32xbf16, #tpu.memory_space<vmem>>, %arg5: memref<32x1xf32, #tpu.memory_space<vmem>>, %arg6: memref<64x32xbf16, #tpu.memory_space<vmem>>, %arg7: memref<64x1xf32, #tpu.memory_space<vmem>>, %arg8: memref<1x32x128xbf16, #tpu.memory_space<vmem>>, %arg9: memref<1x64x128xf32, #tpu.memory_space<vmem>>) attributes {dimension_semantics = [#tpu.dimension_semantics<parallel>, #tpu.dimension_semantics<parallel>], iteration_bounds = array<i64: 2, 1>, scalar_prefetch = 0 : i64, scratch_operands = 0 : i64, tpu.core_type = #tpu.core_type<tc>, window_params = [{transform_indices = @transform_0, window_bounds = array<i64: 1, 32, 128>}, {transform_indices = @transform_1, window_bounds = array<i64: 1, 1, 128>}, {pipeline_mode = #tpu.pipeline_mode<synchronous>, transform_indices = @transform_2, window_bounds = array<i64: 32, 32>}, {pipeline_mode = #tpu.pipeline_mode<synchronous>, transform_indices = @transform_3, window_bounds = array<i64: 32, 1>}, {pipeline_mode = #tpu.pipeline_mode<synchronous>, transform_indices = @transform_4, window_bounds = array<i64: 64, 32>}, {pipeline_mode = #tpu.pipeline_mode<synchronous>, transform_indices = @transform_5, window_bounds = array<i64: 64, 1>}, {transform_indices = @transform_6, window_bounds = array<i64: 1, 32, 128>}, {transform_indices = @transform_7, window_bounds = array<i64: 1, 64, 128>}]} {
    %c0 = arith.constant 0 : index
    %c0_0 = arith.constant 0 : index
    %c0_1 = arith.constant 0 : index
    %0 = vector.load %arg3[%c0, %c0_0, %c0_1] : memref<1x1x128xf32, #tpu.memory_space<vmem>>, vector<1x1x128xf32>
    %1 = vector.shape_cast %0 : vector<1x1x128xf32> to vector<1x128xf32>
    %c0_2 = arith.constant 0 : index
    %c0_3 = arith.constant 0 : index
    %c0_4 = arith.constant 0 : index
    %2 = vector.load %arg2[%c0_2, %c0_3, %c0_4] : memref<1x32x128xbf16, #tpu.memory_space<vmem>>, vector<1x32x128xbf16>
    %3 = vector.shape_cast %2 : vector<1x32x128xbf16> to vector<32x128xbf16>
    %4 = arith.truncf %1 : vector<1x128xf32> to vector<1x128xbf16>
    %5 = vector.broadcast %4 : vector<1x128xbf16> to vector<32x128xbf16>
    %6 = arith.mulf %3, %5 : vector<32x128xbf16>
    %c0_5 = arith.constant 0 : index
    %c0_6 = arith.constant 0 : index
    %7 = vector.load %arg4[%c0_5, %c0_6] : memref<32x32xbf16, #tpu.memory_space<vmem>>, vector<32x32xbf16>
    %cst = arith.constant dense<0.000000e+00> : vector<32x128xf32>
    %8 = tpu.matmul %7, %6, %cst {dimension_numbers = #tpu.dot_dimension_numbers<[1], [0], [0], [1], [0, 0, 1, 1], [], []>} : vector<32x32xbf16>, vector<32x128xbf16>, vector<32x128xf32> -> vector<32x128xf32>
    %c0_7 = arith.constant 0 : index
    %c0_8 = arith.constant 0 : index
    %9 = vector.load %arg5[%c0_7, %c0_8] : memref<32x1xf32, #tpu.memory_space<vmem>>, vector<32x1xf32>
    %10 = vector.broadcast %9 : vector<32x1xf32> to vector<32x128xf32>
    %11 = arith.addf %8, %10 : vector<32x128xf32>
    %cst_9 = arith.constant 0.000000e+00 : f32
    %12 = vector.broadcast %cst_9 : f32 to vector<32x128xf32>
    %13 = arith.maximumf %11, %12 : vector<32x128xf32>
    %14 = vector.broadcast %1 : vector<1x128xf32> to vector<32x128xf32>
    %15 = arith.mulf %13, %14 : vector<32x128xf32>
    %c0_10 = arith.constant 0 : index
    %c0_11 = arith.constant 0 : index
    %16 = vector.load %arg6[%c0_10, %c0_11] : memref<64x32xbf16, #tpu.memory_space<vmem>>, vector<64x32xbf16>
    %17 = arith.truncf %15 : vector<32x128xf32> to vector<32x128xbf16>
    %cst_12 = arith.constant dense<0.000000e+00> : vector<64x128xf32>
    %18 = tpu.matmul %16, %17, %cst_12 {dimension_numbers = #tpu.dot_dimension_numbers<[1], [0], [0], [1], [0, 0, 1, 1], [], []>} : vector<64x32xbf16>, vector<32x128xbf16>, vector<64x128xf32> -> vector<64x128xf32>
    %c0_13 = arith.constant 0 : index
    %c0_14 = arith.constant 0 : index
    %19 = vector.load %arg7[%c0_13, %c0_14] : memref<64x1xf32, #tpu.memory_space<vmem>>, vector<64x1xf32>
    %20 = vector.broadcast %19 : vector<64x1xf32> to vector<64x128xf32>
    %21 = arith.addf %18, %20 : vector<64x128xf32>
    %22 = vector.broadcast %1 : vector<1x128xf32> to vector<64x128xf32>
    %23 = arith.mulf %21, %22 : vector<64x128xf32>
    %24 = arith.truncf %15 : vector<32x128xf32> to vector<32x128xbf16>
    %c0_15 = arith.constant 0 : index
    %c0_16 = arith.constant 0 : index
    %c0_17 = arith.constant 0 : index
    %25 = vector.load %arg8[%c0_15, %c0_16, %c0_17] : memref<1x32x128xbf16, #tpu.memory_space<vmem>>, vector<1x32x128xbf16>
    %26 = vector.shape_cast %25 : vector<1x32x128xbf16> to vector<32x128xbf16>
    %27 = vector.shape_cast %24 : vector<32x128xbf16> to vector<1x32x128xbf16>
    tpu.vector_store %arg8[%c0_15, %c0_16, %c0_17], %27 {strides = array<i32>} : memref<1x32x128xbf16, #tpu.memory_space<vmem>>, vector<1x32x128xbf16>,
    %c0_18 = arith.constant 0 : index
    %c0_19 = arith.constant 0 : index
    %c0_20 = arith.constant 0 : index
    %28 = vector.load %arg9[%c0_18, %c0_19, %c0_20] : memref<1x64x128xf32, #tpu.memory_space<vmem>>, vector<1x64x128xf32>
    %29 = vector.shape_cast %28 : vector<1x64x128xf32> to vector<64x128xf32>
    %30 = vector.shape_cast %23 : vector<64x128xf32> to vector<1x64x128xf32>
    tpu.vector_store %arg9[%c0_18, %c0_19, %c0_20], %30 {strides = array<i32>} : memref<1x64x128xf32, #tpu.memory_space<vmem>>, vector<1x64x128xf32>,
    return
  }
  func.func @transform_0(%arg0: i32, %arg1: i32) -> (i32, i32, i32) {
    %c0_i32 = arith.constant 0 : i32
    %c0_i32_0 = arith.constant 0 : i32
    return %arg0, %c0_i32, %arg1 : i32, i32, i32
  }
  func.func @transform_1(%arg0: i32, %arg1: i32) -> (i32, i32, i32) {
    %c0_i32 = arith.constant 0 : i32
    %c0_i32_0 = arith.constant 0 : i32
    return %arg0, %c0_i32, %arg1 : i32, i32, i32
  }
  func.func @transform_2(%arg0: i32, %arg1: i32) -> (i32, i32) {
    %c0_i32 = arith.constant 0 : i32
    %c0_i32_0 = arith.constant 0 : i32
    %c0_i32_1 = arith.constant 0 : i32
    return %c0_i32, %c0_i32_0 : i32, i32
  }
  func.func @transform_3(%arg0: i32, %arg1: i32) -> (i32, i32) {
    %c0_i32 = arith.constant 0 : i32
    %c0_i32_0 = arith.constant 0 : i32
    %c0_i32_1 = arith.constant 0 : i32
    return %c0_i32, %c0_i32_0 : i32, i32
  }
  func.func @transform_4(%arg0: i32, %arg1: i32) -> (i32, i32) {
    %c0_i32 = arith.constant 0 : i32
    %c0_i32_0 = arith.constant 0 : i32
    %c0_i32_1 = arith.constant 0 : i32
    return %c0_i32, %c0_i32_0 : i32, i32
  }
  func.func @transform_5(%arg0: i32, %arg1: i32) -> (i32, i32) {
    %c0_i32 = arith.constant 0 : i32
    %c0_i32_0 = arith.constant 0 : i32
    %c0_i32_1 = arith.constant 0 : i32
    return %c0_i32, %c0_i32_0 : i32, i32
  }
  func.func @transform_6(%arg0: i32, %arg1: i32) -> (i32, i32, i32) {
    %c0_i32 = arith.constant 0 : i32
    %c0_i32_0 = arith.constant 0 : i32
    return %arg0, %c0_i32, %arg1 : i32, i32, i32
  }
  func.func @transform_7(%arg0: i32, %arg1: i32) -> (i32, i32, i32) {
    %c0_i32 = arith.constant 0 : i32
    %c0_i32_0 = arith.constant 0 : i32
    return %arg0, %c0_i32, %arg1 : i32, i32, i32
  }
}

module attributes {stable_mosaic.version = 11 : i64} {
  func.func @_flow_kernel(%arg0: i32, %arg1: i32, %arg2: memref<1x32x128xbf16, #tpu.memory_space<vmem>>, %arg3: memref<1x1x128xf32, #tpu.memory_space<vmem>>, %arg4: memref<32x16xbf16, #tpu.memory_space<vmem>>, %arg5: memref<32x1xf32, #tpu.memory_space<vmem>>, %arg6: memref<16x32xbf16, #tpu.memory_space<vmem>>, %arg7: memref<16x1xf32, #tpu.memory_space<vmem>>, %arg8: memref<1x32x128xbf16, #tpu.memory_space<vmem>>) attributes {dimension_semantics = [#tpu.dimension_semantics<parallel>, #tpu.dimension_semantics<parallel>], iteration_bounds = array<i64: 2, 1>, scalar_prefetch = 0 : i64, scratch_operands = 0 : i64, tpu.core_type = #tpu.core_type<tc>, window_params = [{transform_indices = @transform_0, window_bounds = array<i64: 1, 32, 128>}, {transform_indices = @transform_1, window_bounds = array<i64: 1, 1, 128>}, {pipeline_mode = #tpu.pipeline_mode<synchronous>, transform_indices = @transform_2, window_bounds = array<i64: 32, 16>}, {pipeline_mode = #tpu.pipeline_mode<synchronous>, transform_indices = @transform_3, window_bounds = array<i64: 32, 1>}, {pipeline_mode = #tpu.pipeline_mode<synchronous>, transform_indices = @transform_4, window_bounds = array<i64: 16, 32>}, {pipeline_mode = #tpu.pipeline_mode<synchronous>, transform_indices = @transform_5, window_bounds = array<i64: 16, 1>}, {transform_indices = @transform_6, window_bounds = array<i64: 1, 32, 128>}]} {
    %c0 = arith.constant 0 : index
    %c0_0 = arith.constant 0 : index
    %c0_1 = arith.constant 0 : index
    %0 = vector.load %arg3[%c0, %c0_0, %c0_1] : memref<1x1x128xf32, #tpu.memory_space<vmem>>, vector<1x1x128xf32>
    %1 = vector.shape_cast %0 : vector<1x1x128xf32> to vector<1x128xf32>
    %2 = arith.truncf %1 : vector<1x128xf32> to vector<1x128xbf16>
    %c0_2 = arith.constant 0 : index
    %c0_3 = arith.constant 0 : index
    %c0_4 = arith.constant 0 : index
    %3 = vector.load %arg2[%c0_2, %c0_3, %c0_4] : memref<1x32x128xbf16, #tpu.memory_space<vmem>>, vector<1x16x128xbf16>
    %4 = vector.shape_cast %3 : vector<1x16x128xbf16> to vector<16x128xbf16>
    %c0_5 = arith.constant 0 : index
    %c16 = arith.constant 16 : index
    %c0_6 = arith.constant 0 : index
    %5 = vector.load %arg2[%c0_5, %c16, %c0_6] : memref<1x32x128xbf16, #tpu.memory_space<vmem>>, vector<1x16x128xbf16>
    %6 = vector.shape_cast %5 : vector<1x16x128xbf16> to vector<16x128xbf16>
    %7 = arith.extf %6 : vector<16x128xbf16> to vector<16x128xf32>
    %c0_7 = arith.constant 0 : index
    %c0_8 = arith.constant 0 : index
    %8 = vector.load %arg4[%c0_7, %c0_8] : memref<32x16xbf16, #tpu.memory_space<vmem>>, vector<32x16xbf16>
    %9 = vector.broadcast %2 : vector<1x128xbf16> to vector<16x128xbf16>
    %10 = arith.mulf %4, %9 : vector<16x128xbf16>
    %cst = arith.constant dense<0.000000e+00> : vector<32x128xf32>
    %11 = tpu.matmul %8, %10, %cst {dimension_numbers = #tpu.dot_dimension_numbers<[1], [0], [0], [1], [0, 0, 1, 1], [], []>} : vector<32x16xbf16>, vector<16x128xbf16>, vector<32x128xf32> -> vector<32x128xf32>
    %c0_9 = arith.constant 0 : index
    %c0_10 = arith.constant 0 : index
    %12 = vector.load %arg5[%c0_9, %c0_10] : memref<32x1xf32, #tpu.memory_space<vmem>>, vector<32x1xf32>
    %13 = vector.broadcast %12 : vector<32x1xf32> to vector<32x128xf32>
    %14 = arith.addf %11, %13 : vector<32x128xf32>
    %cst_11 = arith.constant 0.000000e+00 : f32
    %15 = vector.broadcast %cst_11 : f32 to vector<32x128xf32>
    %16 = arith.maximumf %14, %15 : vector<32x128xf32>
    %17 = vector.broadcast %1 : vector<1x128xf32> to vector<32x128xf32>
    %18 = arith.mulf %16, %17 : vector<32x128xf32>
    %c0_12 = arith.constant 0 : index
    %c0_13 = arith.constant 0 : index
    %19 = vector.load %arg6[%c0_12, %c0_13] : memref<16x32xbf16, #tpu.memory_space<vmem>>, vector<16x32xbf16>
    %20 = arith.truncf %18 : vector<32x128xf32> to vector<32x128xbf16>
    %cst_14 = arith.constant dense<0.000000e+00> : vector<16x128xf32>
    %21 = tpu.matmul %19, %20, %cst_14 {dimension_numbers = #tpu.dot_dimension_numbers<[1], [0], [0], [1], [0, 0, 1, 1], [], []>} : vector<16x32xbf16>, vector<32x128xbf16>, vector<16x128xf32> -> vector<16x128xf32>
    %c0_15 = arith.constant 0 : index
    %c0_16 = arith.constant 0 : index
    %22 = vector.load %arg7[%c0_15, %c0_16] : memref<16x1xf32, #tpu.memory_space<vmem>>, vector<16x1xf32>
    %23 = vector.broadcast %22 : vector<16x1xf32> to vector<16x128xf32>
    %24 = arith.addf %21, %23 : vector<16x128xf32>
    %25 = vector.broadcast %1 : vector<1x128xf32> to vector<16x128xf32>
    %26 = arith.mulf %24, %25 : vector<16x128xf32>
    %27 = arith.addf %7, %26 : vector<16x128xf32>
    %28 = vector.broadcast %1 : vector<1x128xf32> to vector<16x128xf32>
    %29 = arith.mulf %27, %28 : vector<16x128xf32>
    %c0_17 = arith.constant 0 : index
    %c0_18 = arith.constant 0 : index
    %c0_19 = arith.constant 0 : index
    %30 = vector.load %arg8[%c0_17, %c0_18, %c0_19] : memref<1x32x128xbf16, #tpu.memory_space<vmem>>, vector<1x16x128xbf16>
    %31 = vector.shape_cast %30 : vector<1x16x128xbf16> to vector<16x128xbf16>
    %32 = vector.shape_cast %4 : vector<16x128xbf16> to vector<1x16x128xbf16>
    tpu.vector_store %arg8[%c0_17, %c0_18, %c0_19], %32 {strides = array<i32>} : memref<1x32x128xbf16, #tpu.memory_space<vmem>>, vector<1x16x128xbf16>,
    %33 = arith.truncf %29 : vector<16x128xf32> to vector<16x128xbf16>
    %c0_20 = arith.constant 0 : index
    %c16_21 = arith.constant 16 : index
    %c0_22 = arith.constant 0 : index
    %34 = vector.load %arg8[%c0_20, %c16_21, %c0_22] : memref<1x32x128xbf16, #tpu.memory_space<vmem>>, vector<1x16x128xbf16>
    %35 = vector.shape_cast %34 : vector<1x16x128xbf16> to vector<16x128xbf16>
    %36 = vector.shape_cast %33 : vector<16x128xbf16> to vector<1x16x128xbf16>
    tpu.vector_store %arg8[%c0_20, %c16_21, %c0_22], %36 {strides = array<i32>} : memref<1x32x128xbf16, #tpu.memory_space<vmem>>, vector<1x16x128xbf16>,
    return
  }
  func.func @transform_0(%arg0: i32, %arg1: i32) -> (i32, i32, i32) {
    %c0_i32 = arith.constant 0 : i32
    %c0_i32_0 = arith.constant 0 : i32
    return %arg0, %c0_i32, %arg1 : i32, i32, i32
  }
  func.func @transform_1(%arg0: i32, %arg1: i32) -> (i32, i32, i32) {
    %c0_i32 = arith.constant 0 : i32
    %c0_i32_0 = arith.constant 0 : i32
    return %arg0, %c0_i32, %arg1 : i32, i32, i32
  }
  func.func @transform_2(%arg0: i32, %arg1: i32) -> (i32, i32) {
    %c0_i32 = arith.constant 0 : i32
    %c0_i32_0 = arith.constant 0 : i32
    %c0_i32_1 = arith.constant 0 : i32
    return %c0_i32, %c0_i32_0 : i32, i32
  }
  func.func @transform_3(%arg0: i32, %arg1: i32) -> (i32, i32) {
    %c0_i32 = arith.constant 0 : i32
    %c0_i32_0 = arith.constant 0 : i32
    %c0_i32_1 = arith.constant 0 : i32
    return %c0_i32, %c0_i32_0 : i32, i32
  }
  func.func @transform_4(%arg0: i32, %arg1: i32) -> (i32, i32) {
    %c0_i32 = arith.constant 0 : i32
    %c0_i32_0 = arith.constant 0 : i32
    %c0_i32_1 = arith.constant 0 : i32
    return %c0_i32, %c0_i32_0 : i32, i32
  }
  func.func @transform_5(%arg0: i32, %arg1: i32) -> (i32, i32) {
    %c0_i32 = arith.constant 0 : i32
    %c0_i32_0 = arith.constant 0 : i32
    %c0_i32_1 = arith.constant 0 : i32
    return %c0_i32, %c0_i32_0 : i32, i32
  }
  func.func @transform_6(%arg0: i32, %arg1: i32) -> (i32, i32, i32) {
    %c0_i32 = arith.constant 0 : i32
    %c0_i32_0 = arith.constant 0 : i32
    return %arg0, %c0_i32, %arg1 : i32, i32, i32
  }
}

module attributes {stable_mosaic.version = 11 : i64} {
  func.func @_dp_kernel(%arg0: i32, %arg1: i32, %arg2: memref<1x32x128xbf16, #tpu.memory_space<vmem>>, %arg3: memref<1x1x128xf32, #tpu.memory_space<vmem>>, %arg4: memref<16x32xbf16, #tpu.memory_space<vmem>>, %arg5: memref<16x1xf32, #tpu.memory_space<vmem>>, %arg6: memref<16x16xbf16, #tpu.memory_space<vmem>>, %arg7: memref<16x1xf32, #tpu.memory_space<vmem>>, %arg8: memref<16x1xf32, #tpu.memory_space<vmem>>, %arg9: memref<1x1xf32, #tpu.memory_space<vmem>>, %arg10: memref<1x1x128xf32, #tpu.memory_space<vmem>>) attributes {dimension_semantics = [#tpu.dimension_semantics<parallel>, #tpu.dimension_semantics<parallel>], iteration_bounds = array<i64: 2, 1>, scalar_prefetch = 0 : i64, scratch_operands = 0 : i64, tpu.core_type = #tpu.core_type<tc>, window_params = [{transform_indices = @transform_0, window_bounds = array<i64: 1, 32, 128>}, {transform_indices = @transform_1, window_bounds = array<i64: 1, 1, 128>}, {pipeline_mode = #tpu.pipeline_mode<synchronous>, transform_indices = @transform_2, window_bounds = array<i64: 16, 32>}, {pipeline_mode = #tpu.pipeline_mode<synchronous>, transform_indices = @transform_3, window_bounds = array<i64: 16, 1>}, {pipeline_mode = #tpu.pipeline_mode<synchronous>, transform_indices = @transform_4, window_bounds = array<i64: 16, 16>}, {pipeline_mode = #tpu.pipeline_mode<synchronous>, transform_indices = @transform_5, window_bounds = array<i64: 16, 1>}, {pipeline_mode = #tpu.pipeline_mode<synchronous>, transform_indices = @transform_6, window_bounds = array<i64: 16, 1>}, {pipeline_mode = #tpu.pipeline_mode<synchronous>, transform_indices = @transform_7, window_bounds = array<i64: 1, 1>}, {transform_indices = @transform_8, window_bounds = array<i64: 1, 1, 128>}]} {
    %c0 = arith.constant 0 : index
    %c0_0 = arith.constant 0 : index
    %c0_1 = arith.constant 0 : index
    %0 = vector.load %arg3[%c0, %c0_0, %c0_1] : memref<1x1x128xf32, #tpu.memory_space<vmem>>, vector<1x1x128xf32>
    %1 = vector.shape_cast %0 : vector<1x1x128xf32> to vector<1x128xf32>
    %2 = arith.truncf %1 : vector<1x128xf32> to vector<1x128xbf16>
    %c0_2 = arith.constant 0 : index
    %c0_3 = arith.constant 0 : index
    %c0_4 = arith.constant 0 : index
    %3 = vector.load %arg2[%c0_2, %c0_3, %c0_4] : memref<1x32x128xbf16, #tpu.memory_space<vmem>>, vector<1x32x128xbf16>
    %4 = vector.shape_cast %3 : vector<1x32x128xbf16> to vector<32x128xbf16>
    %5 = vector.broadcast %2 : vector<1x128xbf16> to vector<32x128xbf16>
    %6 = arith.mulf %4, %5 : vector<32x128xbf16>
    %c0_5 = arith.constant 0 : index
    %c0_6 = arith.constant 0 : index
    %7 = vector.load %arg4[%c0_5, %c0_6] : memref<16x32xbf16, #tpu.memory_space<vmem>>, vector<16x32xbf16>
    %cst = arith.constant dense<0.000000e+00> : vector<16x128xf32>
    %8 = tpu.matmul %7, %6, %cst {dimension_numbers = #tpu.dot_dimension_numbers<[1], [0], [0], [1], [0, 0, 1, 1], [], []>} : vector<16x32xbf16>, vector<32x128xbf16>, vector<16x128xf32> -> vector<16x128xf32>
    %c0_7 = arith.constant 0 : index
    %c0_8 = arith.constant 0 : index
    %9 = vector.load %arg5[%c0_7, %c0_8] : memref<16x1xf32, #tpu.memory_space<vmem>>, vector<16x1xf32>
    %10 = vector.broadcast %9 : vector<16x1xf32> to vector<16x128xf32>
    %11 = arith.addf %8, %10 : vector<16x128xf32>
    %cst_9 = arith.constant 0.000000e+00 : f32
    %12 = vector.broadcast %cst_9 : f32 to vector<16x128xf32>
    %13 = arith.maximumf %11, %12 : vector<16x128xf32>
    %14 = vector.broadcast %1 : vector<1x128xf32> to vector<16x128xf32>
    %15 = arith.mulf %13, %14 : vector<16x128xf32>
    %c0_10 = arith.constant 0 : index
    %c0_11 = arith.constant 0 : index
    %16 = vector.load %arg6[%c0_10, %c0_11] : memref<16x16xbf16, #tpu.memory_space<vmem>>, vector<16x16xbf16>
    %17 = arith.truncf %15 : vector<16x128xf32> to vector<16x128xbf16>
    %cst_12 = arith.constant dense<0.000000e+00> : vector<16x128xf32>
    %18 = tpu.matmul %16, %17, %cst_12 {dimension_numbers = #tpu.dot_dimension_numbers<[1], [0], [0], [1], [0, 0, 1, 1], [], []>} : vector<16x16xbf16>, vector<16x128xbf16>, vector<16x128xf32> -> vector<16x128xf32>
    %c0_13 = arith.constant 0 : index
    %c0_14 = arith.constant 0 : index
    %19 = vector.load %arg7[%c0_13, %c0_14] : memref<16x1xf32, #tpu.memory_space<vmem>>, vector<16x1xf32>
    %20 = vector.broadcast %19 : vector<16x1xf32> to vector<16x128xf32>
    %21 = arith.addf %18, %20 : vector<16x128xf32>
    %cst_15 = arith.constant 0.000000e+00 : f32
    %22 = vector.broadcast %cst_15 : f32 to vector<16x128xf32>
    %23 = arith.maximumf %21, %22 : vector<16x128xf32>
    %24 = vector.broadcast %1 : vector<1x128xf32> to vector<16x128xf32>
    %25 = arith.mulf %23, %24 : vector<16x128xf32>
    %c0_16 = arith.constant 0 : index
    %c0_17 = arith.constant 0 : index
    %26 = vector.load %arg8[%c0_16, %c0_17] : memref<16x1xf32, #tpu.memory_space<vmem>>, vector<16x1xf32>
    %27 = vector.broadcast %26 : vector<16x1xf32> to vector<16x128xf32>
    %28 = arith.mulf %27, %25 : vector<16x128xf32>
    %cst_18 = arith.constant dense<0.000000e+00> : vector<128xf32>
    %29 = vector.multi_reduction <add>, %28, %cst_18 [0] : vector<16x128xf32> to vector<128xf32>
    %30 = vector.shape_cast %29 : vector<128xf32> to vector<1x128xf32>
    %c0_19 = arith.constant 0 : index
    %c0_20 = arith.constant 0 : index
    %31 = vector.load %arg9[%c0_19, %c0_20] : memref<1x1xf32, #tpu.memory_space<vmem>>, vector<1x1xf32>
    %32 = vector.broadcast %31 : vector<1x1xf32> to vector<1x128xf32>
    %33 = arith.addf %30, %32 : vector<1x128xf32>
    %34 = arith.mulf %33, %1 : vector<1x128xf32>
    %c0_21 = arith.constant 0 : index
    %c0_22 = arith.constant 0 : index
    %c0_23 = arith.constant 0 : index
    %35 = vector.load %arg10[%c0_21, %c0_22, %c0_23] : memref<1x1x128xf32, #tpu.memory_space<vmem>>, vector<1x1x128xf32>
    %36 = vector.shape_cast %35 : vector<1x1x128xf32> to vector<1x128xf32>
    %37 = vector.shape_cast %34 : vector<1x128xf32> to vector<1x1x128xf32>
    tpu.vector_store %arg10[%c0_21, %c0_22, %c0_23], %37 {strides = array<i32>} : memref<1x1x128xf32, #tpu.memory_space<vmem>>, vector<1x1x128xf32>,
    return
  }
  func.func @transform_0(%arg0: i32, %arg1: i32) -> (i32, i32, i32) {
    %c0_i32 = arith.constant 0 : i32
    %c0_i32_0 = arith.constant 0 : i32
    return %arg0, %c0_i32, %arg1 : i32, i32, i32
  }
  func.func @transform_1(%arg0: i32, %arg1: i32) -> (i32, i32, i32) {
    %c0_i32 = arith.constant 0 : i32
    %c0_i32_0 = arith.constant 0 : i32
    return %arg0, %c0_i32, %arg1 : i32, i32, i32
  }
  func.func @transform_2(%arg0: i32, %arg1: i32) -> (i32, i32) {
    %c0_i32 = arith.constant 0 : i32
    %c0_i32_0 = arith.constant 0 : i32
    %c0_i32_1 = arith.constant 0 : i32
    return %c0_i32, %c0_i32_0 : i32, i32
  }
  func.func @transform_3(%arg0: i32, %arg1: i32) -> (i32, i32) {
    %c0_i32 = arith.constant 0 : i32
    %c0_i32_0 = arith.constant 0 : i32
    %c0_i32_1 = arith.constant 0 : i32
    return %c0_i32, %c0_i32_0 : i32, i32
  }
  func.func @transform_4(%arg0: i32, %arg1: i32) -> (i32, i32) {
    %c0_i32 = arith.constant 0 : i32
    %c0_i32_0 = arith.constant 0 : i32
    %c0_i32_1 = arith.constant 0 : i32
    return %c0_i32, %c0_i32_0 : i32, i32
  }
  func.func @transform_5(%arg0: i32, %arg1: i32) -> (i32, i32) {
    %c0_i32 = arith.constant 0 : i32
    %c0_i32_0 = arith.constant 0 : i32
    %c0_i32_1 = arith.constant 0 : i32
    return %c0_i32, %c0_i32_0 : i32, i32
  }
  func.func @transform_6(%arg0: i32, %arg1: i32) -> (i32, i32) {
    %c0_i32 = arith.constant 0 : i32
    %c0_i32_0 = arith.constant 0 : i32
    %c0_i32_1 = arith.constant 0 : i32
    return %c0_i32, %c0_i32_0 : i32, i32
  }
  func.func @transform_7(%arg0: i32, %arg1: i32) -> (i32, i32) {
    %c0_i32 = arith.constant 0 : i32
    %c0_i32_0 = arith.constant 0 : i32
    %c0_i32_1 = arith.constant 0 : i32
    return %c0_i32, %c0_i32_0 : i32, i32
  }
  func.func @transform_8(%arg0: i32, %arg1: i32) -> (i32, i32, i32) {
    %c0_i32 = arith.constant 0 : i32
    %c0_i32_0 = arith.constant 0 : i32
    return %arg0, %c0_i32, %arg1 : i32, i32, i32
  }
}

module attributes {stable_mosaic.version = 11 : i64} {
  func.func @_mas_fused_kernel(%arg0: i32, %arg1: memref<2xi32, #tpu.memory_space<smem>>, %arg2: memref<2xi32, #tpu.memory_space<smem>>, %arg3: memref<1x32x128xbf16, #tpu.memory_space<vmem>>, %arg4: memref<1x64x128xf32, #tpu.memory_space<vmem>>, %arg5: memref<1x1x128xf32, #tpu.memory_space<vmem>>, %arg6: memref<1x64x128xf32, #tpu.memory_space<vmem>>, %arg7: memref<128x128xf32, #tpu.memory_space<vmem>>) attributes {dimension_semantics = [#tpu.dimension_semantics<parallel>], iteration_bounds = array<i64: 2>, scalar_prefetch = 2 : i64, scratch_operands = 1 : i64, tpu.core_type = #tpu.core_type<tc>, window_params = [{transform_indices = @transform_0, window_bounds = array<i64: 1, 32, 128>}, {transform_indices = @transform_1, window_bounds = array<i64: 1, 64, 128>}, {transform_indices = @transform_2, window_bounds = array<i64: 1, 1, 128>}, {transform_indices = @transform_3, window_bounds = array<i64: 1, 64, 128>}]} {
    %0 = arith.index_cast %arg0 : i32 to index
    %1 = memref.load %arg1[%0] : memref<2xi32, #tpu.memory_space<smem>>
    %2 = arith.index_cast %arg0 : i32 to index
    %3 = memref.load %arg2[%2] : memref<2xi32, #tpu.memory_space<smem>>
    %c0 = arith.constant 0 : index
    %c0_0 = arith.constant 0 : index
    %c0_1 = arith.constant 0 : index
    %4 = vector.load %arg3[%c0, %c0_0, %c0_1] : memref<1x32x128xbf16, #tpu.memory_space<vmem>>, vector<1x32x128xbf16>
    %5 = vector.shape_cast %4 : vector<1x32x128xbf16> to vector<32x128xbf16>
    %6 = arith.extf %5 : vector<32x128xbf16> to vector<32x128xf32>
    %c0_2 = arith.constant 0 : index
    %c0_3 = arith.constant 0 : index
    %c0_4 = arith.constant 0 : index
    %7 = vector.load %arg4[%c0_2, %c0_3, %c0_4] : memref<1x64x128xf32, #tpu.memory_space<vmem>>, vector<1x64x128xf32>
    %8 = vector.shape_cast %7 : vector<1x64x128xf32> to vector<64x128xf32>
    %9 = vector.extract_strided_slice %8 {offsets = [0, 0], sizes = [32, 128], strides = [1, 1]} : vector<64x128xf32> to vector<32x128xf32>
    %10 = vector.extract_strided_slice %8 {offsets = [32, 0], sizes = [32, 128], strides = [1, 1]} : vector<64x128xf32> to vector<32x128xf32>
    %cst = arith.constant -2.000000e+00 : f32
    %11 = vector.broadcast %cst : f32 to vector<32x128xf32>
    %12 = arith.mulf %11, %10 : vector<32x128xf32>
    %13 = math.exp %12 : vector<32x128xf32>
    %cst_5 = arith.constant -0.918938517 : f32
    %14 = vector.broadcast %cst_5 : f32 to vector<32x128xf32>
    %15 = arith.subf %14, %10 : vector<32x128xf32>
    %cst_6 = arith.constant dense<0.000000e+00> : vector<128xf32>
    %16 = vector.multi_reduction <add>, %15, %cst_6 [0] : vector<32x128xf32> to vector<128xf32>
    %17 = vector.shape_cast %16 : vector<128xf32> to vector<1x128xf32>
    %cst_7 = arith.constant -5.000000e-01 : f32
    %18 = vector.broadcast %cst_7 : f32 to vector<32x128xf32>
    %19 = arith.mulf %18, %9 : vector<32x128xf32>
    %20 = arith.mulf %19, %9 : vector<32x128xf32>
    %21 = arith.mulf %20, %13 : vector<32x128xf32>
    %cst_8 = arith.constant dense<0.000000e+00> : vector<128xf32>
    %22 = vector.multi_reduction <add>, %21, %cst_8 [0] : vector<32x128xf32> to vector<128xf32>
    %23 = vector.shape_cast %22 : vector<128xf32> to vector<1x128xf32>
    %cst_9 = arith.constant -5.000000e-01 : f32
    %24 = vector.broadcast %cst_9 : f32 to vector<32x128xf32>
    %25 = arith.mulf %24, %6 : vector<32x128xf32>
    %26 = arith.mulf %25, %6 : vector<32x128xf32>
    %27 = tpu.concatenate %26, %6 in 0 : vector<32x128xf32>, vector<32x128xf32> -> vector<64x128xf32>
    %28 = arith.mulf %9, %13 : vector<32x128xf32>
    %29 = tpu.concatenate %13, %28 in 0 : vector<32x128xf32>, vector<32x128xf32> -> vector<64x128xf32>
    %cst_10 = arith.constant dense<0.000000e+00> : vector<128x128xf32>
    %30 = tpu.matmul %27, %29, %cst_10 {dimension_numbers = #tpu.dot_dimension_numbers<[0], [0], [1], [1], [0, 1, 1, 1], [], []>} : vector<64x128xf32>, vector<64x128xf32>, vector<128x128xf32> -> vector<128x128xf32>
    %31 = vector.broadcast %17 : vector<1x128xf32> to vector<128x128xf32>
    %32 = arith.addf %30, %31 : vector<128x128xf32>
    %33 = vector.broadcast %23 : vector<1x128xf32> to vector<128x128xf32>
    %34 = arith.addf %32, %33 : vector<128x128xf32>
    %c0_11 = arith.constant 0 : index
    %c0_12 = arith.constant 0 : index
    %35 = vector.load %arg7[%c0_11, %c0_12] : memref<128x128xf32, #tpu.memory_space<vmem>>, vector<128x128xf32>
    tpu.vector_store %arg7[%c0_11, %c0_12], %34 {strides = array<i32>} : memref<128x128xf32, #tpu.memory_space<vmem>>, vector<128x128xf32>,
    %36 = tpu.iota {dimensions = array<i32: 1>} : vector<1x128xi32>
    %cst_13 = arith.constant 0.000000e+00 : f32
    %37 = vector.broadcast %cst_13 : f32 to vector<1x128xf32>
    %cst_14 = arith.constant -9.99999986E+14 : f32
    %38 = vector.broadcast %cst_14 : f32 to vector<1x128xf32>
    %c0_i32 = arith.constant 0 : i32
    %39 = arith.subi %3, %c0_i32 : i32
    %40 = arith.addi %c0_i32, %39 : i32
    %c1_i32 = arith.constant 1 : i32
    %41 = scf.for %arg8 = %c0_i32 to %40 step %c1_i32 iter_args(%arg9 = %38) -> (vector<1x128xf32>)  : i32 {
      %60 = arith.index_cast %arg8 : i32 to index
      %c0_31 = arith.constant 0 : index
      %61 = vector.load %arg7[%60, %c0_31] : memref<128x128xf32, #tpu.memory_space<vmem>>, vector<1x128xf32>
      %62 = vector.broadcast %arg8 : i32 to vector<1x128xi32>
      %63 = arith.cmpi eq, %36, %62 : vector<1x128xi32>
      %cst_32 = arith.constant -9.99999986E+14 : f32
      %64 = vector.broadcast %cst_32 : f32 to vector<1x128xf32>
      %65 = arith.select %63, %64, %arg9 : vector<1x128xi1>, vector<1x128xf32>
      %c1_i32_33 = arith.constant 1 : i32
      %66 = tpu.dynamic_rotate %arg9 by %c1_i32_33 dim 1 : vector<1x128xf32>, i32 -> vector<1x128xf32>
      %c0_i32_34 = arith.constant 0 : i32
      %67 = vector.broadcast %c0_i32_34 : i32 to vector<1x128xi32>
      %68 = arith.cmpi eq, %36, %67 : vector<1x128xi32>
      %c0_i32_35 = arith.constant 0 : i32
      %69 = arith.cmpi eq, %arg8, %c0_i32_35 : i32
      %cst_36 = arith.constant 0.000000e+00 : f32
      %cst_37 = arith.constant -9.99999986E+14 : f32
      %70 = arith.select %69, %cst_36, %cst_37 : f32
      %71 = vector.broadcast %70 : f32 to vector<1x128xf32>
      %72 = arith.select %68, %71, %66 : vector<1x128xi1>, vector<1x128xf32>
      %73 = arith.maximumf %65, %72 : vector<1x128xf32>
      %74 = arith.addf %73, %61 : vector<1x128xf32>
      %75 = arith.addi %1, %arg8 : i32
      %76 = arith.subi %75, %3 : i32
      %c0_i32_38 = arith.constant 0 : i32
      %77 = arith.maxsi %c0_i32_38, %76 : i32
      %78 = vector.broadcast %77 : i32 to vector<1x128xi32>
      %79 = arith.cmpi sge, %36, %78 : vector<1x128xi32>
      %c1_i32_39 = arith.constant 1 : i32
      %80 = arith.addi %arg8, %c1_i32_39 : i32
      %81 = arith.minsi %1, %80 : i32
      %82 = vector.broadcast %81 : i32 to vector<1x128xi32>
      %83 = arith.cmpi slt, %36, %82 : vector<1x128xi32>
      %84 = arith.andi %79, %83 : vector<1x128xi1>
      %cst_40 = arith.constant -9.99999986E+14 : f32
      %85 = vector.broadcast %cst_40 : f32 to vector<1x128xf32>
      %86 = arith.select %84, %74, %85 : vector<1x128xi1>, vector<1x128xf32>
      %87 = arith.index_cast %arg8 : i32 to index
      %c0_41 = arith.constant 0 : index
      %88 = vector.load %arg7[%87, %c0_41] : memref<128x128xf32, #tpu.memory_space<vmem>>, vector<1x128xf32>
      tpu.vector_store %arg7[%87, %c0_41], %86 {strides = array<i32>} : memref<128x128xf32, #tpu.memory_space<vmem>>, vector<1x128xf32>,
      scf.yield %86 : vector<1x128xf32>
    }
    %c128_i32 = arith.constant 128 : i32
    %42 = arith.subi %c128_i32, %3 : i32
    %c0_i32_15 = arith.constant 0 : i32
    %c0_i32_16 = arith.constant 0 : i32
    %43 = arith.subi %42, %c0_i32_16 : i32
    %44 = arith.addi %c0_i32_16, %43 : i32
    %c1_i32_17 = arith.constant 1 : i32
    scf.for %arg8 = %c0_i32_16 to %44 step %c1_i32_17  : i32 {
      %60 = arith.addi %3, %arg8 : i32
      %61 = arith.index_cast %60 : i32 to index
      %c0_31 = arith.constant 0 : index
      %62 = vector.load %arg7[%61, %c0_31] : memref<128x128xf32, #tpu.memory_space<vmem>>, vector<1x128xf32>
      tpu.vector_store %arg7[%61, %c0_31], %37 {strides = array<i32>} : memref<128x128xf32, #tpu.memory_space<vmem>>, vector<1x128xf32>,
    }
    %c1_i32_18 = arith.constant 1 : i32
    %45 = arith.subi %1, %c1_i32_18 : i32
    %46 = vector.broadcast %45 : i32 to vector<1x1xi32>
    %c0_i32_19 = arith.constant 0 : i32
    %47 = arith.subi %3, %c0_i32_19 : i32
    %48 = arith.addi %c0_i32_19, %47 : i32
    %c1_i32_20 = arith.constant 1 : i32
    %49 = scf.for %arg8 = %c0_i32_19 to %48 step %c1_i32_20 iter_args(%arg9 = %46) -> (vector<1x1xi32>)  : i32 {
      %c1_i32_31 = arith.constant 1 : i32
      %60 = arith.subi %3, %c1_i32_31 : i32
      %61 = arith.subi %60, %arg8 : i32
      %c1_i32_32 = arith.constant 1 : i32
      %62 = arith.subi %61, %c1_i32_32 : i32
      %c0_i32_33 = arith.constant 0 : i32
      %63 = arith.maxsi %62, %c0_i32_33 : i32
      %64 = arith.index_cast %63 : i32 to index
      %c0_34 = arith.constant 0 : index
      %65 = vector.load %arg7[%64, %c0_34] : memref<128x128xf32, #tpu.memory_space<vmem>>, vector<1x128xf32>
      %66 = vector.broadcast %arg9 : vector<1x1xi32> to vector<1x128xi32>
      %67 = arith.cmpi eq, %36, %66 : vector<1x128xi32>
      %cst_35 = arith.constant 0.000000e+00 : f32
      %68 = vector.broadcast %cst_35 : f32 to vector<1x128xf32>
      %69 = arith.select %67, %65, %68 : vector<1x128xi1>, vector<1x128xf32>
      %cst_36 = arith.constant dense<0.000000e+00> : vector<1xf32>
      %70 = vector.multi_reduction <add>, %69, %cst_36 [1] : vector<1x128xf32> to vector<1xf32>
      %71 = vector.shape_cast %70 : vector<1xf32> to vector<1x1xf32>
      %c1_i32_37 = arith.constant 1 : i32
      %72 = vector.broadcast %c1_i32_37 : i32 to vector<1x1xi32>
      %73 = arith.subi %arg9, %72 : vector<1x1xi32>
      %74 = vector.broadcast %73 : vector<1x1xi32> to vector<1x128xi32>
      %75 = arith.cmpi eq, %36, %74 : vector<1x128xi32>
      %cst_38 = arith.constant 0.000000e+00 : f32
      %76 = vector.broadcast %cst_38 : f32 to vector<1x128xf32>
      %77 = arith.select %75, %65, %76 : vector<1x128xi1>, vector<1x128xf32>
      %cst_39 = arith.constant dense<0.000000e+00> : vector<1xf32>
      %78 = vector.multi_reduction <add>, %77, %cst_39 [1] : vector<1x128xf32> to vector<1xf32>
      %79 = vector.shape_cast %78 : vector<1xf32> to vector<1x1xf32>
      %80 = vector.broadcast %arg9 : vector<1x1xi32> to vector<1x128xi32>
      %81 = arith.cmpi eq, %36, %80 : vector<1x128xi32>
      %82 = arith.extui %81 : vector<1x128xi1> to vector<1x128xi32>
      %83 = arith.sitofp %82 : vector<1x128xi32> to vector<1x128xf32>
      %84 = arith.index_cast %61 : i32 to index
      %c0_40 = arith.constant 0 : index
      %85 = vector.load %arg7[%84, %c0_40] : memref<128x128xf32, #tpu.memory_space<vmem>>, vector<1x128xf32>
      tpu.vector_store %arg7[%84, %c0_40], %83 {strides = array<i32>} : memref<128x128xf32, #tpu.memory_space<vmem>>, vector<1x128xf32>,
      %c0_i32_41 = arith.constant 0 : i32
      %86 = vector.broadcast %c0_i32_41 : i32 to vector<1x1xi32>
      %87 = arith.cmpi ne, %arg9, %86 : vector<1x1xi32>
      %88 = vector.broadcast %61 : i32 to vector<1x1xi32>
      %89 = arith.cmpi eq, %arg9, %88 : vector<1x1xi32>
      %90 = arith.cmpf olt, %71, %79 : vector<1x1xf32>
      %91 = arith.ori %89, %90 : vector<1x1xi1>
      %92 = arith.andi %87, %91 : vector<1x1xi1>
      %c1_i32_42 = arith.constant 1 : i32
      %93 = vector.broadcast %c1_i32_42 : i32 to vector<1x1xi32>
      %94 = arith.subi %arg9, %93 : vector<1x1xi32>
      %95 = arith.select %92, %94, %arg9 : vector<1x1xi1>, vector<1x1xi32>
      scf.yield %95 : vector<1x1xi32>
    }
    %c0_21 = arith.constant 0 : index
    %c0_22 = arith.constant 0 : index
    %50 = vector.load %arg7[%c0_21, %c0_22] : memref<128x128xf32, #tpu.memory_space<vmem>>, vector<128x128xf32>
    %cst_23 = arith.constant dense<0.000000e+00> : vector<128xf32>
    %51 = vector.multi_reduction <add>, %50, %cst_23 [0] : vector<128x128xf32> to vector<128xf32>
    %52 = vector.shape_cast %51 : vector<128xf32> to vector<1x128xf32>
    %c0_24 = arith.constant 0 : index
    %c0_25 = arith.constant 0 : index
    %c0_26 = arith.constant 0 : index
    %53 = vector.load %arg5[%c0_24, %c0_25, %c0_26] : memref<1x1x128xf32, #tpu.memory_space<vmem>>, vector<1x1x128xf32>
    %54 = vector.shape_cast %53 : vector<1x1x128xf32> to vector<1x128xf32>
    %55 = vector.shape_cast %52 : vector<1x128xf32> to vector<1x1x128xf32>
    tpu.vector_store %arg5[%c0_24, %c0_25, %c0_26], %55 {strides = array<i32>} : memref<1x1x128xf32, #tpu.memory_space<vmem>>, vector<1x1x128xf32>,
    %cst_27 = arith.constant dense<0.000000e+00> : vector<64x128xf32>
    %56 = tpu.matmul %8, %50, %cst_27 {dimension_numbers = #tpu.dot_dimension_numbers<[1], [1], [0], [0], [0, 0, 1, 0], [], []>} : vector<64x128xf32>, vector<128x128xf32>, vector<64x128xf32> -> vector<64x128xf32>
    %c0_28 = arith.constant 0 : index
    %c0_29 = arith.constant 0 : index
    %c0_30 = arith.constant 0 : index
    %57 = vector.load %arg6[%c0_28, %c0_29, %c0_30] : memref<1x64x128xf32, #tpu.memory_space<vmem>>, vector<1x64x128xf32>
    %58 = vector.shape_cast %57 : vector<1x64x128xf32> to vector<64x128xf32>
    %59 = vector.shape_cast %56 : vector<64x128xf32> to vector<1x64x128xf32>
    tpu.vector_store %arg6[%c0_28, %c0_29, %c0_30], %59 {strides = array<i32>} : memref<1x64x128xf32, #tpu.memory_space<vmem>>, vector<1x64x128xf32>,
    return
  }
  func.func @transform_0(%arg0: i32, %arg1: memref<2xi32, #tpu.memory_space<smem>>, %arg2: memref<2xi32, #tpu.memory_space<smem>>) -> (i32, i32, i32) {
    %c0_i32 = arith.constant 0 : i32
    %c0_i32_0 = arith.constant 0 : i32
    %c0_i32_1 = arith.constant 0 : i32
    return %arg0, %c0_i32, %c0_i32_0 : i32, i32, i32
  }
  func.func @transform_1(%arg0: i32, %arg1: memref<2xi32, #tpu.memory_space<smem>>, %arg2: memref<2xi32, #tpu.memory_space<smem>>) -> (i32, i32, i32) {
    %c0_i32 = arith.constant 0 : i32
    %c0_i32_0 = arith.constant 0 : i32
    %c0_i32_1 = arith.constant 0 : i32
    return %arg0, %c0_i32, %c0_i32_0 : i32, i32, i32
  }
  func.func @transform_2(%arg0: i32, %arg1: memref<2xi32, #tpu.memory_space<smem>>, %arg2: memref<2xi32, #tpu.memory_space<smem>>) -> (i32, i32, i32) {
    %c0_i32 = arith.constant 0 : i32
    %c0_i32_0 = arith.constant 0 : i32
    %c0_i32_1 = arith.constant 0 : i32
    return %arg0, %c0_i32, %c0_i32_0 : i32, i32, i32
  }
  func.func @transform_3(%arg0: i32, %arg1: memref<2xi32, #tpu.memory_space<smem>>, %arg2: memref<2xi32, #tpu.memory_space<smem>>) -> (i32, i32, i32) {
    %c0_i32 = arith.constant 0 : i32
    %c0_i32_0 = arith.constant 0 : i32
    %c0_i32_1 = arith.constant 0 : i32
    return %arg0, %c0_i32, %c0_i32_0 : i32, i32, i32
  }
}

</mosaic_0001>

<bundles_post_ra>
// kernel: _lambda_.7
= control target key start
LH: loop header
LB: loop body
LE: loop exit
PB: predicated region body
PF: predicated region fallthrough
CT: control target
= control target key end

     0   :  { %s858_s21 = smov 0   ;;  %s860_s22 = smov 0   ;;  %s973_s0 = inlined_call_operand.vmem [shape: bf16[2,16,128], index: 0, kind: input, shape index: {}]   ;;  %s974_s1 = inlined_call_operand.vmem [shape: f32[2,1,128], index: 1, kind: input, shape index: {}]   ;;  %s975_s2 = inlined_call_operand.vmem [shape: bf16[32,16], index: 2, kind: input, shape index: {}]   ;;  %s976_s3 = inlined_call_operand.vmem [shape: f32[32,1], index: 3, kind: input, shape index: {}]   ;;  %s977_s4 = inlined_call_operand.vmem [shape: bf16[64,32], index: 4, kind: input, shape index: {}]   ;;  %s978_s5 = inlined_call_operand.vmem [shape: f32[64,1], index: 5, kind: input, shape index: {}]   ;;  %s979_s6 = inlined_call_operand.vmem [shape: f32[2,64,128], index: 6, kind: output, shape index: {}]  }
   0x1   :  { %s862_s23 = smov 0  }
   0x2 LB: > { %s28_s24 = sadd.s32 1, %s816_s22  ;;  %p711_p0 = scmp.ge.s32.totalorder %s820_s23, 1  ;;  %s820_s23 = sphi %s862_s23, %s16_s23   ;;  %s816_s22 = sphi %s860_s22, %s981_s22   ;;  %s812_s21 = sphi %s858_s21, %s980_s21  }
   0x3   : > { %p30_p1 = scmp.ge.s32.totalorder %s28_s24, 2  ;;  %p244_p2 = scmp.lt.s32.totalorder %s820_s23, 3 }
   0x5   : > { %s983_s24 = smov (%p30_p1, %s28_s24), 0  ;;  %p245_p3 = pnand %p711_p0, %p244_p2 }
   0x6   : > { %p286_p4 = scmp.lt.s32.totalorder (!%p245_p3), %s812_s21, 1 }
   0x7   : > { %248 = sbr.rel (%p245_p3) target bundleno = 448 (0x1c0), region = 44 }
   0xc   : > { %v316_v0 = vlaneseq  ;;  %v792_v1 = vld [vmem:[%s975_s2] sm:$0xff]   ;;  %vm370_vm0 = vcmask 130048   ;;  %s985_s21 = smov (!%p286_p4, %s812_s21), 1  ;;  %v332_v3 = vld [vmem:[%s976_s3 + $0x10] sm:$0xff]  ;;  %v822_v5 = vmov 0   ;;  %v333_v8 = vld [vmem:[%s976_s3 + $0x18] sm:$0xff] }
   0xd   : > { %745 = vmatprep.mubr.msk.bf16.mxu0 %vm370_vm0, %v792_v1  ;;  %v330_v4 = vld [vmem:[%s976_s3] sm:$0xff]  ;;  %790 = vset.pattern.permute.xlu0 %v822_v5  ;;  %s299_s9 = scalar_lea.vmem %s974_s1, %s985_s21  ;;  %s732_s10 = sshll.u32 %s985_s21, 3  ;;  %v331_v9 = vld [vmem:[%s976_s3 + $0x8] sm:$0xff]  ;;  %v452_v19 = vld [vmem:[%s978_s5 + $0x10] sm:$0xff]  ;;  %vm518_vm1 = vcmask 261120  }
   0xe   : > { %v317_v2 = vshrl.u32 %v316_v0, 7  ;;  %791 = vset.pattern.permute.xlu1 %v822_v5  ;;  %346 = vperm.xlu0 %790, %v332_v3   ;;  %v309_v7 = vld [vmem:[%s299_s9] sm:$0x1]  ;;  %s293_s19 = scalar_lea.vmem %s973_s0, %s732_s10  ;;  %v451_v14 = vld [vmem:[%s978_s5 + $0x8] sm:$0xff]  ;;  %v453_v20 = vld [vmem:[%s978_s5 + $0x18] sm:$0xff]  ;;  %s733_s28 = sshll.u32 %s985_s21, 6 }
   0xf   : > { %336 = vperm.xlu1 %791, %v330_v4   ;;  %v312_v10 = vpack.c.bf16 %v309_v7, %v309_v7  ;;  %v450_v12 = vld [vmem:[%s978_s5] sm:$0xff]  ;;  %v455_v25 = vld [vmem:[%s978_s5 + $0x28] sm:$0xff]  ;;  %v456_v27 = vld [vmem:[%s978_s5 + $0x30] sm:$0xff]  ;;  %s307_s7 = scalar_lea.vmem %s979_s6, %s733_s28 }
  0x10   : > { %v318_v6 = vsub.s32 0, %v317_v2  ;;  %v310_v16 = vld [vmem:[%s293_s19] sm:$0xf]  ;;  %v311_v17 = vld [vmem:[%s293_s19 + $0x4] sm:$0xf]  ;;  %v793_v26 = vld [vmem:[%s975_s2 + $0x8] sm:$0xff]  }
  0x11   : > { %v314_v13 = vpack.i.b16 %v312_v10, %v312_v10  ;;  %v454_v24 = vld [vmem:[%s978_s5 + $0x20] sm:$0xff]  ;;  %v457_v28 = vld [vmem:[%s978_s5 + $0x38] sm:$0xff]  ;;  %v795_v30 = vld [vmem:[%s977_s4 + $0x10] sm:$0xff]  }
  0x12   : > { %v899_v11 = vrot.slane %v309_v7, %v318_v6  ;;  %351 = vperm.xlu0 %790, %v333_v8   ;;  %v794_v29 = vld [vmem:[%s977_s4] sm:$0xff]   ;;  %757 = vmatprep.mubr.msk.bf16.mxu1 %vm518_vm1, %v795_v30  ;;  %v796_v53 = vld [vmem:[%s977_s4 + $0x8] sm:$0xff]   ;;  %v797_v54 = vld [vmem:[%s977_s4 + $0x18] sm:$0xff]  }
  0x13   : > { %341 = vperm.xlu1 %791, %v331_v9   ;;  %v319_v15 = vrot.slane %v314_v13, %v318_v6 }
  0x15   : > { %v716_v18 = vcombine.low %v319_v15, %v319_v15 }
  0x16   : > { %460 = vperm.xlu0 %790, %v450_v12  }
  0x17   : > { %465 = vperm.xlu1 %791, %v451_v14   ;;  %v324_v21 = vmul.bf16 %v716_v18, %v310_v16  ;;  %v325_v22 = vmul.bf16 %v716_v18, %v311_v17 }
  0x19   : > { %v719_v23 = vcombine.low %v324_v21, %v325_v22 }
  0x1a   : > { %470 = vperm.xlu0 %790, %v452_v19  }
  0x1b   : > { %475 = vperm.xlu1 %791, %v453_v20   ;;  %743 = vmatprep.subr.bf16.mxu0 %v719_v23 }
  0x1c   : > { %744 = vmatpush3.bf16.msra.mxu0 %v719_v23 }
  0x1e   : > { %480 = vperm.xlu0 %790, %v454_v24  }
  0x1f   : > { %485 = vperm.xlu1 %791, %v455_v25   ;;  %746 = vmatmul.mubr.msk.bf16.vlgmr.msra.gmra.mxu0 %vm370_vm0, %v793_v26 }
  0x20   : > { %753 = vmatprep.mubr.msk.bf16.mxu0 %vm518_vm1, %v794_v29 }
  0x22   : > { %490 = vperm.xlu0 %790, %v456_v27  }
  0x23   : > { %495 = vperm.xlu1 %791, %v457_v28  }
  0x89   : > { %v347_v31 = vpop.permute.xlu0 %346 }
  0x8a   : > { %v337_v32 = vpop.permute.xlu1 %336 }
  0x8d   : > { %v352_v37 = vpop.permute.xlu0 %351 }
  0x8e   : > { %v342_v41 = vpop.permute.xlu1 %341 }
  0x91   : > { %v461_v55 = vpop.permute.xlu0 %460 }
  0x92   : > { %v466_v56 = vpop.permute.xlu1 %465 }
  0x95   : > { %v471_v57 = vpop.permute.xlu0 %470 }
  0x96   : > { %v476_v58 = vpop.permute.xlu1 %475 }
  0x99   : > { %v481_v59 = vpop.permute.xlu0 %480 }
  0x9a   : > { %v486_v60 = vpop.permute.xlu1 %485 }
  0x9d   : > { %v491_v61 = vpop.permute.xlu0 %490 }
  0x9e   : > { %v496_v4 = vpop.permute.xlu1 %495 }
  0xdf   : > { %v747_v33 = vpop.f32.mrf.mxu0 }
  0xe0   : > { %v420_v34 = vadd.f32 %v747_v33, %v347_v31 }
  0xe1   : > { %v411_v35 = vpop.f32.mrf.mxu0 }
  0xe2   : > { %v412_v36 = vadd.f32 %v411_v35, %v337_v32  ;;  %v428_v39 = vmax.f32 %v420_v34, 0.0 }
  0xe3   : > { %v748_v38 = vpop.f32.mrf.mxu0 }
  0xe4   : > { %v423_v40 = vadd.f32 %v748_v38, %v352_v37  ;;  %v426_v43 = vmax.f32 %v412_v36, 0.0  ;;  %v438_v46 = vmul.f32 %v899_v11, %v428_v39 }
  0xe5   : > { %v414_v42 = vpop.f32.mrf.mxu0 }
  0xe6   : > { %v429_v44 = vmax.f32 %v423_v40, 0.0  ;;  %v415_v45 = vadd.f32 %v414_v42, %v342_v41  ;;  %v436_v49 = vmul.f32 %v899_v11, %v426_v43 }
  0xe8   : > { %v439_v47 = vmul.f32 %v899_v11, %v429_v44  ;;  %v427_v48 = vmax.f32 %v415_v45, 0.0 }
  0xea   : > { %v449_v50 = vpack.c.bf16 %v439_v47, %v438_v46  ;;  %v437_v51 = vmul.f32 %v899_v11, %v427_v48 }
  0xec   : > { %v448_v52 = vpack.c.bf16 %v437_v51, %v436_v49  ;;  %749 = vmatprep.subr.bf16.mxu0 %v449_v50  ;;  %761 = vmatprep.subr.bf16.mxu1 %v449_v50 }
  0xed   : > { %750 = vmatpush3.bf16.msra.mxu0 %v449_v50  ;;  %763 = vmatpush3.bf16.msra.mxu1 %v449_v50 }
  0xee   : > { %751 = vmatprep.subr.bf16.mxu0 %v448_v52  ;;  %762 = vmatprep.subr.bf16.mxu1 %v448_v52 }
  0xf1   : > { %752 = vmatpush3.bf16.msra.mxu0 %v448_v52  ;;  %764 = vmatpush3.bf16.msra.mxu1 %v448_v52 }
  0xf4   : > { %754 = vmatmul.mubr.msk.bf16.vlgmr.msra.gmra.mxu0 %vm518_vm1, %v796_v53  ;;  %758 = vmatmul.mubr.msk.bf16.vlgmr.msra.gmra.mxu1 %vm518_vm1, %v797_v54 }
 0x1b4   : > { %v755_v62 = vpop.f32.mrf.mxu0  ;;  %v759_v63 = vpop.f32.mrf.mxu1 }
 0x1b5   : > { %v574_v0 = vadd.f32 %v755_v62, %v471_v57  ;;  %v590_v1 = vadd.f32 %v759_v63, %v491_v61 }
 0x1b6   : > { %v565_v2 = vpop.f32.mrf.mxu0  ;;  %v581_v3 = vpop.f32.mrf.mxu1 }
 0x1b7   : > { %v598_v5 = vmul.f32 %v574_v0, %v899_v11  ;;  %v602_v6 = vmul.f32 %v590_v1, %v899_v11  ;;  %v566_v7 = vadd.f32 %v565_v2, %v461_v55  ;;  %v582_v8 = vadd.f32 %v581_v3, %v481_v59 }
 0x1b8   : > { %v756_v9 = vpop.f32.mrf.mxu0  ;;  %v760_v10 = vpop.f32.mrf.mxu1 }
 0x1b9   : > { %606 = vst [vmem:[%s307_s7 + $0x10] sm:$0xff] %v598_v5  ;;  %610 = vst [vmem:[%s307_s7 + $0x30] sm:$0xff] %v602_v6  ;;  %v596_v12 = vmul.f32 %v566_v7, %v899_v11  ;;  %v600_v13 = vmul.f32 %v582_v8, %v899_v11  ;;  %v577_v14 = vadd.f32 %v756_v9, %v476_v58 }
 0x1ba   : > { %v593_v15 = vadd.f32 %v760_v10, %v496_v4  ;;  %v568_v16 = vpop.f32.mrf.mxu0  ;;  %v584_v17 = vpop.f32.mrf.mxu1 }
 0x1bb   : > { %604 = vst [vmem:[%s307_s7] sm:$0xff] %v596_v12  ;;  %608 = vst [vmem:[%s307_s7 + $0x20] sm:$0xff] %v600_v13  ;;  %v599_v18 = vmul.f32 %v577_v14, %v899_v11  ;;  %v569_v20 = vadd.f32 %v568_v16, %v466_v56  ;;  %v585_v21 = vadd.f32 %v584_v17, %v486_v60 }
 0x1bc   : > { %v603_v19 = vmul.f32 %v593_v15, %v899_v11 }
 0x1bd   : > { %607 = vst [vmem:[%s307_s7 + $0x18] sm:$0xff] %v599_v18  ;;  %v597_v22 = vmul.f32 %v569_v20, %v899_v11  ;;  %v601_v23 = vmul.f32 %v585_v21, %v899_v11 }
 0x1be   : > { %611 = vst [vmem:[%s307_s7 + $0x38] sm:$0xff] %v603_v19 }
 0x1bf   : > { %605 = vst [vmem:[%s307_s7 + $0x8] sm:$0xff] %v597_v22  ;;  %609 = vst [vmem:[%s307_s7 + $0x28] sm:$0xff] %v601_v23 }
 0x1c0 PF: > { %s16_s23 = sadd.s32 1, %s820_s23   ;;  %s980_s21 = smov %s816_s22 }
 0x1c1   : > { %p13_p5 = scmp.ge.s32.totalorder %s16_s23, 4   ;;  %s981_s22 = smov %s983_s24 }
 0x1c3   :  { %15 = sbr.rel (!%p13_p5) target bundleno = 2 (0x2), region = 77 }

// kernel: _lambda_.8
= control target key start
LH: loop header
LB: loop body
LE: loop exit
PB: predicated region body
PF: predicated region fallthrough
CT: control target
= control target key end

     0   :  { %s598_s18 = smov 0   ;;  %s600_s19 = smov 0   ;;  %s650_s0 = inlined_call_operand.vmem [shape: bf16[2,32,128], index: 0, kind: input, shape index: {}]   ;;  %s651_s1 = inlined_call_operand.vmem [shape: bf16[16,32], index: 1, kind: input, shape index: {}]   ;;  %s652_s2 = inlined_call_operand.vmem [shape: f32[16,1], index: 2, kind: input, shape index: {}]   ;;  %s653_s3 = inlined_call_operand.vmem [shape: bf16[4,16], index: 3, kind: input, shape index: {}]   ;;  %s654_s4 = inlined_call_operand.vmem [shape: f32[4,1], index: 4, kind: input, shape index: {}]   ;;  %s655_s5 = inlined_call_operand.vmem [shape: f32[2,4,128], index: 5, kind: output, shape index: {}]  }
   0x1   :  { %s602_s20 = smov 0  }
   0x2 LB: > { %s27_s21 = sadd.s32 1, %s559_s19  ;;  %p476_p0 = scmp.ge.s32.totalorder %s563_s20, 1  ;;  %s563_s20 = sphi %s602_s20, %s15_s20   ;;  %s559_s19 = sphi %s600_s19, %s657_s19   ;;  %s555_s18 = sphi %s598_s18, %s656_s18  }
   0x3   : > { %p29_p1 = scmp.ge.s32.totalorder %s27_s21, 2  ;;  %p206_p2 = scmp.lt.s32.totalorder %s563_s20, 3 }
   0x5   : > { %s659_s21 = smov (%p29_p1, %s27_s21), 0  ;;  %p207_p3 = pnand %p476_p0, %p206_p2 }
   0x6   : > { %p239_p4 = scmp.lt.s32.totalorder (!%p207_p3), %s555_s18, 1 }
   0x7   : > { %210 = sbr.rel (%p207_p3) target bundleno = 440 (0x1b8), region = 40 }
   0xc   : > { %v565_v0 = vmov 0.0   ;;  %vm566_vm0 = vmmov 0   ;;  %v261_v1 = vld [vmem:[%s652_s2] sm:$0xff]  ;;  %s661_s18 = smov (!%p239_p4, %s555_s18), 1  ;;  %v567_v2 = vmov 0   ;;  %v262_v3 = vld [vmem:[%s652_s2 + $0x8] sm:$0xff] }
   0xd   : > { %493 = vmatprep.subr.bf16.mxu0 %v565_v0  ;;  %497 = vmatprep.mubr.msk.bf16.mxu0 %vm566_vm0, %v565_v0  ;;  %s487_s24 = sshll.u32 %s661_s18, 4  ;;  %v538_v6 = vld [vmem:[%s651_s1] sm:$0xff]   ;;  %vm290_vm1 = vcmask 261120   ;;  %vm349_vm4 = vcmask 130048   ;;  %s479_s11 = sshll.u32 %s661_s18, 2 }
   0xe   : > { %534 = vset.pattern.permute.xlu0 %v567_v2  ;;  %501 = vmatprep.subr.bf16.mxu1 %v565_v0  ;;  %s246_s29 = scalar_lea.vmem %s650_s0, %s487_s24  ;;  %v343_v7 = vld [vmem:[%s654_s4] sm:$0xf]  ;;  %s253_s14 = scalar_lea.vmem %s655_s5, %s479_s11 }
   0xf   : > { %265 = vperm.xlu0 %534, %v261_v1   ;;  %503 = vmatprep.mubr.msk.bf16.mxu1 %vm566_vm0, %v565_v0  ;;  %v536_v4 = vld [vmem:[%s246_s29 + $0x8] sm:$0xff]   ;;  %v537_v5 = vld [vmem:[%s246_s29] sm:$0xff]  }
  0x10   : > { %535 = vset.pattern.permute.xlu1 %v567_v2  ;;  %494 = vmatpush3.bf16.msra.mxu0 %v536_v4  ;;  %v341_v21 = vld [vmem:[%s653_s3] sm:$0x3] }
  0x11   : > { %495 = vmatprep.subr.bf16.mxu0 %v565_v0  ;;  %346 = vperm.xlu1 %535, %v343_v7  }
  0x13   : > { %270 = vperm.xlu0 %534, %v262_v3  }
  0x14   : > { %496 = vmatpush3.bf16.msra.mxu0 %v537_v5 }
  0x17   : > { %498 = vmatmul.mubr.msk.bf16.vlgmr.msra.gmra.mxu0 %vm290_vm1, %v538_v6 }
  0x8a   : > { %v266_v8 = vpop.permute.xlu0 %265 }
  0x8c   : > { %v347_v22 = vpop.permute.xlu1 %346 }
  0x8e   : > { %v271_v12 = vpop.permute.xlu0 %270 }
  0xd7   : > { %v328_v9 = vpop.f32.mrf.mxu0 }
  0xd8   : > { %v329_v10 = vadd.f32 %v328_v9, %v266_v8 }
  0xd9   : > { %v499_v11 = vpop.f32.mrf.mxu0 }
  0xda   : > { %v337_v14 = vmul.f32 0.1, %v329_v10  ;;  %vm335_vm2 = vcmp.ge.f32.partialorder %v329_v10, 0.0 }
  0xdb   : > { %v331_v13 = vpop.f32.mrf.mxu0 }
  0xdc   : > { %v332_v15 = vadd.f32 %v331_v13, %v271_v12  ;;  %v339_v18 = vsel %vm335_vm2, %v329_v10, %v337_v14 }
  0xdd   : > { %v500_v16 = vpop.f32.mrf.mxu0 }
  0xde   : > { %v338_v17 = vmul.f32 0.1, %v332_v15  ;;  %vm336_vm3 = vcmp.ge.f32.partialorder %v332_v15, 0.0 }
  0xe0   : > { %v340_v19 = vsel %vm336_vm3, %v332_v15, %v338_v17 }
  0xe1   : > { %v342_v20 = vpack.c.bf16 %v340_v19, %v339_v18 }
  0xe3   : > { %502 = vmatpush3.bf16.msra.mxu1 %v342_v20 }
  0xe6   : > { %504 = vmatmul.mubr.msk.bf16.vlgmr.msra.gmra.mxu1 %vm349_vm4, %v341_v21 }
 0x1a6   : > { %v387_v23 = vpop.f32.mrf.mxu1 }
 0x1a7   : > { %v388_v24 = vadd.f32 %v387_v23, %v347_v22 }
 0x1a8   : > { %v505_v25 = vpop.f32.mrf.mxu1 }
 0x1a9   : > { %539 = vtanh.f32 %v388_v24 }
 0x1aa   : > { %v390_v26 = vpop.f32.mrf.mxu1 }
 0x1ac   : > { %v506_v27 = vpop.f32.mrf.mxu1 }
 0x1b6   : > { %v540_v28 = vpop.eup %539 }
 0x1b7   : > { %394 = vst [vmem:[%s253_s14] sm:$0xf] %v540_v28 }
 0x1b8 PF: > { %s15_s20 = sadd.s32 1, %s563_s20   ;;  %s656_s18 = smov %s559_s19 }
 0x1b9   : > { %p12_p5 = scmp.ge.s32.totalorder %s15_s20, 4   ;;  %s657_s19 = smov %s659_s21 }
 0x1bb   :  { %14 = sbr.rel (!%p12_p5) target bundleno = 2 (0x2), region = 70 }

// kernel: _lambda_.11
= control target key start
LH: loop header
LB: loop body
LE: loop exit
PB: predicated region body
PF: predicated region fallthrough
CT: control target
= control target key end

     0   :  { %s773_s21 = smov 0   ;;  %s775_s22 = smov 0   ;;  %s858_s0 = inlined_call_operand.vmem [shape: bf16[2,32,128], index: 0, kind: input, shape index: {}]   ;;  %s859_s1 = inlined_call_operand.vmem [shape: f32[2,1,128], index: 1, kind: input, shape index: {}]   ;;  %s860_s2 = inlined_call_operand.vmem [shape: bf16[32,16], index: 2, kind: input, shape index: {}]   ;;  %s861_s3 = inlined_call_operand.vmem [shape: f32[32,1], index: 3, kind: input, shape index: {}]   ;;  %s862_s4 = inlined_call_operand.vmem [shape: bf16[16,32], index: 4, kind: input, shape index: {}]   ;;  %s863_s5 = inlined_call_operand.vmem [shape: f32[16,1], index: 5, kind: input, shape index: {}]   ;;  %s864_s6 = inlined_call_operand.vmem [shape: bf16[2,32,128], index: 6, kind: output, shape index: {}]  }
   0x1   :  { %s777_s23 = smov 0  }
   0x2 LB: > { %s28_s24 = sadd.s32 1, %s729_s22  ;;  %p627_p0 = scmp.ge.s32.totalorder %s733_s23, 1  ;;  %s733_s23 = sphi %s777_s23, %s16_s23   ;;  %s729_s22 = sphi %s775_s22, %s866_s22   ;;  %s725_s21 = sphi %s773_s21, %s865_s21  }
   0x3   : > { %p30_p1 = scmp.ge.s32.totalorder %s28_s24, 2  ;;  %p244_p2 = scmp.lt.s32.totalorder %s733_s23, 3 }
   0x5   : > { %s868_s24 = smov (%p30_p1, %s28_s24), 0  ;;  %p245_p3 = pnand %p627_p0, %p244_p2 }
   0x6   : > { %p286_p4 = scmp.lt.s32.totalorder (!%p245_p3), %s725_s21, 1 }
   0x7   : > { %248 = sbr.rel (%p245_p3) target bundleno = 451 (0x1c3), region = 44 }
   0xc   : > { %v324_v0 = vlaneseq  ;;  %v708_v1 = vld [vmem:[%s860_s2] sm:$0xff]   ;;  %vm374_vm0 = vcmask 130048   ;;  %s870_s21 = smov (!%p286_p4, %s725_s21), 1  ;;  %v336_v3 = vld [vmem:[%s861_s3 + $0x10] sm:$0xff]  ;;  %v735_v5 = vmov 0   ;;  %v337_v8 = vld [vmem:[%s861_s3 + $0x18] sm:$0xff] }
   0xd   : > { %667 = vmatprep.mubr.msk.bf16.mxu0 %vm374_vm0, %v708_v1  ;;  %v334_v4 = vld [vmem:[%s861_s3] sm:$0xff]  ;;  %706 = vset.pattern.permute.xlu0 %v735_v5  ;;  %s644_s7 = sshll.u32 %s870_s21, 4  ;;  %s299_s10 = scalar_lea.vmem %s859_s1, %s870_s21  ;;  %v335_v9 = vld [vmem:[%s861_s3 + $0x8] sm:$0xff]  ;;  %v736_v23 = vmov 0.0   ;;  %vm737_vm1 = vmmov 0   ;;  %vm465_vm2 = vcmask 261120  }
   0xe   : > { %v325_v2 = vshrl.u32 %v324_v0, 7  ;;  %707 = vset.pattern.permute.xlu1 %v735_v5  ;;  %350 = vperm.xlu0 %706, %v336_v3   ;;  %s807_s13 = scalar_lea.vmem %s858_s0, %s644_s7  ;;  %s812_s16 = scalar_lea.vmem %s864_s6, %s644_s7  ;;  %v309_v7 = vld [vmem:[%s299_s10] sm:$0x1]  ;;  %v449_v16 = vld [vmem:[%s863_s5 + $0x8] sm:$0xff] }
   0xf   : > { %340 = vperm.xlu1 %707, %v334_v4   ;;  %v310_v10 = vpack.c.bf16 %v309_v7, %v309_v7  ;;  %v311_v11 = vld [vmem:[%s807_s13] sm:$0xf]  ;;  %v312_v12 = vld [vmem:[%s807_s13 + $0x4] sm:$0xf]  ;;  %v709_v22 = vld [vmem:[%s860_s2 + $0x8] sm:$0xff]   ;;  %671 = vmatprep.subr.bf16.mxu1 %v736_v23 }
  0x10   : > { %v326_v6 = vsub.s32 0, %v325_v2  ;;  %516 = vst [vmem:[%s812_s16] sm:$0xf] %v311_v11  ;;  %517 = vst [vmem:[%s812_s16 + $0x4] sm:$0xf] %v312_v12  ;;  %v448_v15 = vld [vmem:[%s863_s5] sm:$0xff]  ;;  %675 = vmatprep.mubr.msk.bf16.mxu1 %vm737_vm1, %v736_v23  ;;  %v657_v48 = vld [vmem:[%s807_s13 + $0x8] sm:$0xff]  }
  0x11   : > { %v322_v14 = vpack.i.b16 %v310_v10, %v310_v10  ;;  %v710_v46 = vld [vmem:[%s862_s4] sm:$0xff]   ;;  %v650_v52 = vunpack.c.l.bf16 %v657_v48  ;;  %v651_v56 = vunpack.c.h.bf16 %v657_v48 }
  0x12   : > { %v822_v13 = vrot.slane %v309_v7, %v326_v6  ;;  %355 = vperm.xlu0 %706, %v337_v8  }
  0x13   : > { %345 = vperm.xlu1 %707, %v335_v9   ;;  %v327_v17 = vrot.slane %v322_v14, %v326_v6 }
  0x15   : > { %v632_v18 = vcombine.low %v327_v17, %v327_v17 }
  0x16   : > { %452 = vperm.xlu0 %706, %v448_v15  }
  0x17   : > { %457 = vperm.xlu1 %707, %v449_v16   ;;  %v332_v19 = vmul.bf16 %v632_v18, %v311_v11  ;;  %v333_v20 = vmul.bf16 %v632_v18, %v312_v12 }
  0x19   : > { %v635_v21 = vcombine.low %v332_v19, %v333_v20 }
  0x1b   : > { %665 = vmatprep.subr.bf16.mxu0 %v635_v21 }
  0x1c   : > { %666 = vmatpush3.bf16.msra.mxu0 %v635_v21 }
  0x1f   : > { %668 = vmatmul.mubr.msk.bf16.vlgmr.msra.gmra.mxu0 %vm374_vm0, %v709_v22 }
  0x89   : > { %v351_v24 = vpop.permute.xlu0 %350 }
  0x8a   : > { %v341_v25 = vpop.permute.xlu1 %340 }
  0x8d   : > { %v356_v29 = vpop.permute.xlu0 %355 }
  0x8e   : > { %v346_v34 = vpop.permute.xlu1 %345 }
  0x91   : > { %v453_v47 = vpop.permute.xlu0 %452 }
  0x92   : > { %v458_v54 = vpop.permute.xlu1 %457 }
  0xdf   : > { %v669_v26 = vpop.f32.mrf.mxu0 }
  0xe0   : > { %v424_v27 = vadd.f32 %v669_v26, %v351_v24 }
  0xe1   : > { %v415_v28 = vpop.f32.mrf.mxu0 }
  0xe2   : > { %v432_v31 = vmax.f32 %v424_v27, 0.0  ;;  %v416_v32 = vadd.f32 %v415_v28, %v341_v25 }
  0xe3   : > { %v670_v30 = vpop.f32.mrf.mxu0 }
  0xe4   : > { %v427_v33 = vadd.f32 %v670_v30, %v356_v29  ;;  %v442_v38 = vmul.f32 %v822_v13, %v432_v31  ;;  %v430_v39 = vmax.f32 %v416_v32, 0.0 }
  0xe5   : > { %v418_v35 = vpop.f32.mrf.mxu0 }
  0xe6   : > { %v433_v36 = vmax.f32 %v427_v33, 0.0  ;;  %v419_v37 = vadd.f32 %v418_v35, %v346_v34  ;;  %v440_v44 = vmul.f32 %v822_v13, %v430_v39 }
  0xe8   : > { %v443_v40 = vmul.f32 %v822_v13, %v433_v36  ;;  %v431_v41 = vmax.f32 %v419_v37, 0.0 }
  0xea   : > { %v441_v42 = vmul.f32 %v822_v13, %v431_v41  ;;  %v447_v43 = vpack.c.bf16 %v443_v40, %v442_v38 }
  0xec   : > { %672 = vmatpush3.bf16.msra.mxu1 %v447_v43  ;;  %v446_v45 = vpack.c.bf16 %v441_v42, %v440_v44 }
  0xed   : > { %673 = vmatprep.subr.bf16.mxu1 %v736_v23 }
  0xf0   : > { %674 = vmatpush3.bf16.msra.mxu1 %v446_v45 }
  0xf3   : > { %676 = vmatmul.mubr.msk.bf16.vlgmr.msra.gmra.mxu1 %vm465_vm2, %v710_v46 }
 0x1b3   : > { %v503_v49 = vpop.f32.mrf.mxu1 }
 0x1b4   : > { %v504_v50 = vadd.f32 %v503_v49, %v453_v47 }
 0x1b5   : > { %v677_v51 = vpop.f32.mrf.mxu1 }
 0x1b6   : > { %v510_v53 = vmul.f32 %v504_v50, %v822_v13 }
 0x1b7   : > { %v506_v55 = vpop.f32.mrf.mxu1 }
 0x1b8   : > { %v507_v57 = vadd.f32 %v506_v55, %v458_v54  ;;  %v512_v59 = vadd.f32 %v650_v52, %v510_v53 }
 0x1b9   : > { %v678_v58 = vpop.f32.mrf.mxu1 }
 0x1ba   : > { %v511_v60 = vmul.f32 %v507_v57, %v822_v13  ;;  %v514_v62 = vmul.f32 %v512_v59, %v822_v13 }
 0x1bc   : > { %v513_v61 = vadd.f32 %v651_v56, %v511_v60 }
 0x1be   : > { %v515_v63 = vmul.f32 %v513_v61, %v822_v13 }
 0x1c0   : > { %v655_v0 = vpack.c.bf16 %v515_v63, %v514_v62 }
 0x1c2   : > { %658 = vst [vmem:[%s812_s16 + $0x8] sm:$0xff] %v655_v0  }
 0x1c3 PF: > { %s16_s23 = sadd.s32 1, %s733_s23   ;;  %s865_s21 = smov %s729_s22 }
 0x1c4   : > { %p13_p5 = scmp.ge.s32.totalorder %s16_s23, 4   ;;  %s866_s22 = smov %s868_s24 }
 0x1c6   :  { %15 = sbr.rel (!%p13_p5) target bundleno = 2 (0x2), region = 77 }

// kernel: _lambda_.9
= control target key start
LH: loop header
LB: loop body
LE: loop exit
PB: predicated region body
PF: predicated region fallthrough
CT: control target
= control target key end

     0   :  { %s1007_s24 = smov 0   ;;  %s1009_s25 = smov 0   ;;  %s1139_s0 = inlined_call_operand.vmem [shape: bf16[2,32,128], index: 0, kind: input, shape index: {}]   ;;  %s1140_s1 = inlined_call_operand.vmem [shape: f32[2,1,128], index: 1, kind: input, shape index: {}]   ;;  %s1141_s2 = inlined_call_operand.vmem [shape: bf16[32,32], index: 2, kind: input, shape index: {}]   ;;  %s1142_s3 = inlined_call_operand.vmem [shape: f32[32,1], index: 3, kind: input, shape index: {}]   ;;  %s1143_s4 = inlined_call_operand.vmem [shape: bf16[64,32], index: 4, kind: input, shape index: {}]   ;;  %s1144_s5 = inlined_call_operand.vmem [shape: f32[64,1], index: 5, kind: input, shape index: {}]   ;;  %s1145_s6 = inlined_call_operand.vmem [shape: bf16[2,32,128], index: 6, kind: output, shape index: {0}]   ;;  %s1146_s7 = inlined_call_operand.vmem [shape: f32[2,64,128], index: 7, kind: output, shape index: {1}]  }
   0x1   :  { %s1011_s26 = smov 0  }
   0x2 LB: > { %s30_s27 = sadd.s32 1, %s960_s25  ;;  %p833_p0 = scmp.ge.s32.totalorder %s964_s26, 1  ;;  %s964_s26 = sphi %s1011_s26, %s18_s26   ;;  %s960_s25 = sphi %s1009_s25, %s1148_s25   ;;  %s956_s24 = sphi %s1007_s24, %s1147_s24  }
   0x3   : > { %p32_p1 = scmp.ge.s32.totalorder %s30_s27, 2  ;;  %p274_p2 = scmp.lt.s32.totalorder %s964_s26, 3 }
   0x5   : > { %s1150_s27 = smov (%p32_p1, %s30_s27), 0  ;;  %p275_p3 = pnand %p833_p0, %p274_p2 }
   0x6   : > { %p326_p4 = scmp.lt.s32.totalorder (!%p275_p3), %s956_s24, 1 }
   0x7   : > { %278 = sbr.rel (%p275_p3) target bundleno = 460 (0x1cc), region = 44 }
   0xc   : > { %v366_v0 = vlaneseq  ;;  %v936_v1 = vld [vmem:[%s1141_s2] sm:$0xff]   ;;  %vm428_vm0 = vcmask 261120   ;;  %s1152_s24 = smov (!%p326_p4, %s956_s24), 1  ;;  %v384_v3 = vld [vmem:[%s1142_s3 + $0x10] sm:$0xff]  ;;  %v966_v5 = vmov 0   ;;  %v385_v8 = vld [vmem:[%s1142_s3 + $0x18] sm:$0xff] }
   0xd   : > { %893 = vmatprep.mubr.msk.bf16.mxu0 %vm428_vm0, %v936_v1  ;;  %v382_v4 = vld [vmem:[%s1142_s3] sm:$0xff]  ;;  %934 = vset.pattern.permute.xlu0 %v966_v5  ;;  %s861_s11 = sshll.u32 %s1152_s24, 4  ;;  %s339_s14 = scalar_lea.vmem %s1140_s1, %s1152_s24  ;;  %v383_v9 = vld [vmem:[%s1142_s3 + $0x8] sm:$0xff]  ;;  %v510_v21 = vld [vmem:[%s1144_s5 + $0x10] sm:$0xff] }
   0xe   : > { %v367_v2 = vshrl.u32 %v366_v0, 7  ;;  %935 = vset.pattern.permute.xlu1 %v966_v5  ;;  %398 = vperm.xlu0 %934, %v384_v3   ;;  %v357_v7 = vld [vmem:[%s339_s14] sm:$0x1]  ;;  %s333_s21 = scalar_lea.vmem %s1139_s0, %s861_s11  ;;  %v509_v13 = vld [vmem:[%s1144_s5 + $0x8] sm:$0xff]  ;;  %v511_v22 = vld [vmem:[%s1144_s5 + $0x18] sm:$0xff]  ;;  %s347_s30 = scalar_lea.vmem %s1145_s6, %s861_s11 }
   0xf   : > { %388 = vperm.xlu1 %935, %v382_v4   ;;  %v362_v10 = vpack.c.bf16 %v357_v7, %v357_v7  ;;  %v508_v12 = vld [vmem:[%s1144_s5] sm:$0xff]  ;;  %v360_v15 = vld [vmem:[%s333_s21 + $0x8] sm:$0xf]  ;;  %v361_v17 = vld [vmem:[%s333_s21 + $0xc] sm:$0xf]  ;;  %s863_s14 = sshll.u32 %s1152_s24, 6 }
  0x10   : > { %v368_v6 = vsub.s32 0, %v367_v2  ;;  %v358_v18 = vld [vmem:[%s333_s21] sm:$0xf]  ;;  %v359_v19 = vld [vmem:[%s333_s21 + $0x4] sm:$0xf]  ;;  %v513_v30 = vld [vmem:[%s1144_s5 + $0x28] sm:$0xff]  ;;  %s1112_s17 = scalar_lea.vmem %s1146_s7, %s863_s14 }
  0x11   : > { %v364_v14 = vpack.i.b16 %v362_v10, %v362_v10  ;;  %v512_v29 = vld [vmem:[%s1144_s5 + $0x20] sm:$0xff]  ;;  %v514_v31 = vld [vmem:[%s1144_s5 + $0x30] sm:$0xff]  ;;  %v937_v32 = vld [vmem:[%s1141_s2 + $0x8] sm:$0xff]  }
  0x12   : > { %v1048_v11 = vrot.slane %v357_v7, %v368_v6  ;;  %403 = vperm.xlu0 %934, %v385_v8   ;;  %v515_v33 = vld [vmem:[%s1144_s5 + $0x38] sm:$0xff]  ;;  %v938_v34 = vld [vmem:[%s1143_s4] sm:$0xff]   ;;  %v939_v57 = vld [vmem:[%s1143_s4 + $0x8] sm:$0xff]  }
  0x13   : > { %393 = vperm.xlu1 %935, %v383_v9   ;;  %v369_v16 = vrot.slane %v364_v14, %v368_v6  ;;  %901 = vmatprep.mubr.msk.bf16.mxu1 %vm428_vm0, %v938_v34  ;;  %v940_v58 = vld [vmem:[%s1143_s4 + $0x10] sm:$0xff]   ;;  %v941_v59 = vld [vmem:[%s1143_s4 + $0x18] sm:$0xff]  }
  0x15   : > { %v840_v20 = vcombine.low %v369_v16, %v369_v16 }
  0x16   : > { %518 = vperm.xlu0 %934, %v508_v12  }
  0x17   : > { %523 = vperm.xlu1 %935, %v509_v13   ;;  %v376_v23 = vmul.bf16 %v840_v20, %v360_v15  ;;  %v377_v24 = vmul.bf16 %v840_v20, %v361_v17  ;;  %v374_v25 = vmul.bf16 %v840_v20, %v358_v18  ;;  %v375_v26 = vmul.bf16 %v840_v20, %v359_v19 }
  0x19   : > { %v844_v27 = vcombine.low %v376_v23, %v377_v24  ;;  %v843_v28 = vcombine.low %v374_v25, %v375_v26 }
  0x1a   : > { %528 = vperm.xlu0 %934, %v510_v21  }
  0x1b   : > { %533 = vperm.xlu1 %935, %v511_v22   ;;  %889 = vmatprep.subr.bf16.mxu0 %v844_v27 }
  0x1c   : > { %890 = vmatpush3.bf16.msra.mxu0 %v844_v27 }
  0x1d   : > { %891 = vmatprep.subr.bf16.mxu0 %v843_v28 }
  0x1e   : > { %538 = vperm.xlu0 %934, %v512_v29  }
  0x1f   : > { %543 = vperm.xlu1 %935, %v513_v30  }
  0x20   : > { %892 = vmatpush3.bf16.msra.mxu0 %v843_v28 }
  0x22   : > { %548 = vperm.xlu0 %934, %v514_v31  }
  0x23   : > { %553 = vperm.xlu1 %935, %v515_v33   ;;  %894 = vmatmul.mubr.msk.bf16.vlgmr.msra.gmra.mxu0 %vm428_vm0, %v937_v32 }
  0x89   : > { %v399_v35 = vpop.permute.xlu0 %398 }
  0x8a   : > { %v389_v36 = vpop.permute.xlu1 %388 }
  0x8d   : > { %v404_v41 = vpop.permute.xlu0 %403 }
  0x8e   : > { %v394_v45 = vpop.permute.xlu1 %393 }
  0x91   : > { %v519_v60 = vpop.permute.xlu0 %518 }
  0x92   : > { %v524_v61 = vpop.permute.xlu1 %523 }
  0x95   : > { %v529_v62 = vpop.permute.xlu0 %528 }
  0x96   : > { %v534_v63 = vpop.permute.xlu1 %533 }
  0x99   : > { %v539_v2 = vpop.permute.xlu0 %538 }
  0x9a   : > { %v544_v9 = vpop.permute.xlu1 %543 }
  0x9d   : > { %v549_v14 = vpop.permute.xlu0 %548 }
  0x9e   : > { %v554_v21 = vpop.permute.xlu1 %553 }
  0xe3   : > { %v895_v37 = vpop.f32.mrf.mxu0 }
  0xe4   : > { %v478_v38 = vadd.f32 %v895_v37, %v399_v35 }
  0xe5   : > { %v469_v39 = vpop.f32.mrf.mxu0 }
  0xe6   : > { %v470_v40 = vadd.f32 %v469_v39, %v389_v36  ;;  %v486_v43 = vmax.f32 %v478_v38, 0.0 }
  0xe7   : > { %v896_v42 = vpop.f32.mrf.mxu0 }
  0xe8   : > { %v481_v44 = vadd.f32 %v896_v42, %v404_v41  ;;  %v484_v47 = vmax.f32 %v470_v40, 0.0  ;;  %v496_v50 = vmul.f32 %v1048_v11, %v486_v43 }
  0xe9   : > { %v472_v46 = vpop.f32.mrf.mxu0 }
  0xea   : > { %v487_v48 = vmax.f32 %v481_v44, 0.0  ;;  %v473_v49 = vadd.f32 %v472_v46, %v394_v45  ;;  %v494_v53 = vmul.f32 %v1048_v11, %v484_v47 }
  0xec   : > { %v497_v51 = vmul.f32 %v1048_v11, %v487_v48  ;;  %v485_v52 = vmax.f32 %v473_v49, 0.0 }
  0xee   : > { %v495_v54 = vmul.f32 %v1048_v11, %v485_v52  ;;  %v507_v55 = vpack.c.bf16 %v497_v51, %v496_v50 }
  0xf0   : > { %897 = vmatprep.subr.bf16.mxu1 %v507_v55  ;;  %878 = vst [vmem:[%s347_s30 + $0x8] sm:$0xff] %v507_v55   ;;  %v506_v56 = vpack.c.bf16 %v495_v54, %v494_v53 }
  0xf1   : > { %898 = vmatpush3.bf16.msra.mxu1 %v507_v55 }
  0xf2   : > { %899 = vmatprep.subr.bf16.mxu1 %v506_v56  ;;  %872 = vst [vmem:[%s347_s30] sm:$0xff] %v506_v56  }
  0xf5   : > { %900 = vmatpush3.bf16.msra.mxu1 %v506_v56 }
  0xf8   : > { %902 = vmatmul.mubr.msk.bf16.vlgmr.msra.gmra.mxu1 %vm428_vm0, %v939_v57 }
  0xf9   : > { %905 = vmatprep.mubr.msk.bf16.mxu1 %vm428_vm0, %v940_v58 }
 0x100   : > { %906 = vmatmul.mubr.msk.bf16.gmra.mxu1 %vm428_vm0, %v941_v59 }
 0x1b8   : > { %v903_v0 = vpop.f32.mrf.mxu1 }
 0x1b9   : > { %v631_v1 = vadd.f32 %v903_v0, %v529_v62 }
 0x1ba   : > { %v622_v3 = vpop.f32.mrf.mxu1 }
 0x1bb   : > { %v655_v4 = vmul.f32 %v631_v1, %v1048_v11  ;;  %v623_v5 = vadd.f32 %v622_v3, %v519_v60 }
 0x1bc   : > { %v904_v6 = vpop.f32.mrf.mxu1 }
 0x1bd   : > { %681 = vst [vmem:[%s1112_s17 + $0x10] sm:$0xff] %v655_v4  ;;  %v653_v7 = vmul.f32 %v623_v5, %v1048_v11  ;;  %v634_v8 = vadd.f32 %v904_v6, %v534_v63 }
 0x1be   : > { %v625_v10 = vpop.f32.mrf.mxu1 }
 0x1bf   : > { %679 = vst [vmem:[%s1112_s17] sm:$0xff] %v653_v7  ;;  %v656_v12 = vmul.f32 %v634_v8, %v1048_v11  ;;  %v626_v13 = vadd.f32 %v625_v10, %v524_v61 }
 0x1c0   : > { %v907_v15 = vpop.f32.mrf.mxu1 }
 0x1c1   : > { %682 = vst [vmem:[%s1112_s17 + $0x18] sm:$0xff] %v656_v12  ;;  %v654_v16 = vmul.f32 %v626_v13, %v1048_v11  ;;  %v647_v17 = vadd.f32 %v907_v15, %v549_v14 }
 0x1c2   : > { %v638_v18 = vpop.f32.mrf.mxu1 }
 0x1c3   : > { %680 = vst [vmem:[%s1112_s17 + $0x8] sm:$0xff] %v654_v16  ;;  %v659_v19 = vmul.f32 %v647_v17, %v1048_v11  ;;  %v639_v20 = vadd.f32 %v638_v18, %v539_v2 }
 0x1c4   : > { %v908_v22 = vpop.f32.mrf.mxu1 }
 0x1c5   : > { %685 = vst [vmem:[%s1112_s17 + $0x30] sm:$0xff] %v659_v19  ;;  %v657_v23 = vmul.f32 %v639_v20, %v1048_v11  ;;  %v650_v24 = vadd.f32 %v908_v22, %v554_v21 }
 0x1c6   : > { %v641_v25 = vpop.f32.mrf.mxu1 }
 0x1c7   : > { %683 = vst [vmem:[%s1112_s17 + $0x20] sm:$0xff] %v657_v23  ;;  %v660_v26 = vmul.f32 %v650_v24, %v1048_v11  ;;  %v642_v27 = vadd.f32 %v641_v25, %v544_v9 }
 0x1c9   : > { %686 = vst [vmem:[%s1112_s17 + $0x38] sm:$0xff] %v660_v26  ;;  %v658_v28 = vmul.f32 %v642_v27, %v1048_v11 }
 0x1cb   : > { %684 = vst [vmem:[%s1112_s17 + $0x28] sm:$0xff] %v658_v28 }
 0x1cc PF: > { %s18_s26 = sadd.s32 1, %s964_s26   ;;  %s1147_s24 = smov %s960_s25 }
 0x1cd   : > { %p15_p5 = scmp.ge.s32.totalorder %s18_s26, 4   ;;  %s1148_s25 = smov %s1150_s27 }
 0x1cf   :  { %17 = sbr.rel (!%p15_p5) target bundleno = 2 (0x2), region = 89 }

// kernel: _lambda_.10
= control target key start
LH: loop header
LB: loop body
LE: loop exit
PB: predicated region body
PF: predicated region fallthrough
CT: control target
= control target key end

     0   :  { %s796_s29 = smov 0   ;;  %s798_s30 = smov 0   ;;  %s872_s0 = inlined_call_operand.vmem [shape: bf16[2,32,128], index: 0, kind: input, shape index: {}]   ;;  %s873_s1 = inlined_call_operand.vmem [shape: f32[2,1,128], index: 1, kind: input, shape index: {}]   ;;  %s874_s2 = inlined_call_operand.vmem [shape: bf16[16,32], index: 2, kind: input, shape index: {}]   ;;  %s875_s3 = inlined_call_operand.vmem [shape: f32[16,1], index: 3, kind: input, shape index: {}]   ;;  %s876_s4 = inlined_call_operand.vmem [shape: bf16[16,16], index: 4, kind: input, shape index: {}]   ;;  %s877_s5 = inlined_call_operand.vmem [shape: f32[16,1], index: 5, kind: input, shape index: {}]   ;;  %s878_s6 = inlined_call_operand.vmem [shape: f32[16,1], index: 6, kind: input, shape index: {}]   ;;  %s879_s7 = inlined_call_operand.<no memory space> [shape: f32[1,1], index: 7, kind: input, shape index: {}]   ;;  %s880_s8 = inlined_call_operand.vmem [shape: f32[2,1,128], index: 8, kind: output, shape index: {}]  }
   0x1   :  { %v13_v0 = vstv %s879_s7  ;;  %s800_s9 = smov 0  }
   0x2   :  { %14 = vst [vmem:[#allocation2] sm:$0x1] %v13_v0 }
   0x3 LB: > { %s32_s7 = sadd.s32 1, %s739_s30  ;;  %p658_p0 = scmp.ge.s32.totalorder %s743_s9, 1  ;;  %s743_s9 = sphi %s800_s9, %s20_s9   ;;  %s739_s30 = sphi %s798_s30, %s882_s30   ;;  %s735_s29 = sphi %s796_s29, %s881_s29  }
   0x4   : > { %p34_p1 = scmp.ge.s32.totalorder %s32_s7, 2  ;;  %p296_p2 = scmp.lt.s32.totalorder %s743_s9, 3 }
   0x6   : > { %s884_s7 = smov (%p34_p1, %s32_s7), 0  ;;  %p297_p3 = pnand %p658_p0, %p296_p2 }
   0x7   : > { %p340_p4 = scmp.lt.s32.totalorder (!%p297_p3), %s735_s29, 1 }
   0x8   : > { %300 = sbr.rel (%p297_p3) target bundleno = 467 (0x1d3), region = 52 }
   0xd   : > { %v370_v1 = vlaneseq  ;;  %v745_v2 = vmov 0.0   ;;  %vm746_vm0 = vmmov 0   ;;  %v384_v3 = vld [vmem:[%s875_s3] sm:$0xff]  ;;  %s886_s29 = smov (!%p340_p4, %s735_s29), 1  ;;  %v747_v5 = vmov 0   ;;  %v385_v6 = vld [vmem:[%s875_s3 + $0x8] sm:$0xff] }
   0xe   : > { %676 = vmatprep.subr.bf16.mxu0 %v745_v2  ;;  %680 = vmatprep.mubr.msk.bf16.mxu0 %vm746_vm0, %v745_v2  ;;  %s670_s12 = sshll.u32 %s886_s29, 4  ;;  %s353_s15 = scalar_lea.vmem %s873_s1, %s886_s29  ;;  %v537_v11 = vld [vmem:[%s878_s6] sm:$0xff]  ;;  %vm413_vm1 = vcmask 261120   ;;  %v472_v27 = vld [vmem:[%s877_s5 + $0x8] sm:$0xff]  ;;  %vm488_vm2 = vcmask 130048  }
   0xf   : > { %v371_v4 = vshrl.u32 %v370_v1, 7  ;;  %717 = vset.pattern.permute.xlu0 %v747_v5  ;;  %684 = vmatprep.subr.bf16.mxu1 %v745_v2  ;;  %v827_v7 = vld [vmem:[%s353_s15] sm:$0x1]  ;;  %s347_s20 = scalar_lea.vmem %s872_s0, %s670_s12  ;;  %v538_v28 = vld [vmem:[%s878_s6 + $0x8] sm:$0xff]  ;;  %s359_s16 = scalar_lea.vmem %s880_s8, %s886_s29 }
  0x10   : > { %388 = vperm.xlu0 %717, %v384_v3   ;;  %686 = vmatprep.mubr.msk.bf16.mxu1 %vm746_vm0, %v745_v2  ;;  %v362_v8 = vpack.c.bf16 %v827_v7, %v827_v7  ;;  %v365_v12 = vld [vmem:[%s347_s20 + $0x8] sm:$0xf]  ;;  %v366_v14 = vld [vmem:[%s347_s20 + $0xc] sm:$0xf]  ;;  %v363_v15 = vld [vmem:[%s347_s20] sm:$0xf] }
  0x11   : > { %718 = vset.pattern.permute.xlu1 %v747_v5  ;;  %v831_v9 = vsub.s32 0, %v371_v4  ;;  %v364_v16 = vld [vmem:[%s347_s20 + $0x4] sm:$0xf]  ;;  %v558_v18 = vld [vmem:[#allocation2] sm:$0x1] }
  0x12   : > { %v368_v10 = vpack.i.b16 %v362_v8, %v362_v8  ;;  %v719_v25 = vld [vmem:[%s874_s2] sm:$0xff]  }
  0x13   : > { %v471_v26 = vld [vmem:[%s877_s5] sm:$0xff]  ;;  %v464_v36 = vrot.slane %v827_v7, %v831_v9 }
  0x14   : > { %393 = vperm.xlu0 %717, %v385_v6   ;;  %v373_v13 = vrot.slane %v368_v10, %v831_v9  ;;  %475 = vperm.xlu1 %718, %v471_v26   ;;  %v720_v43 = vld [vmem:[%s876_s4] sm:$0xff]  }
  0x16   : > { %v661_v17 = vcombine.low %v373_v13, %v373_v13 }
  0x18   : > { %541 = vperm.xlu0 %717, %v537_v11   ;;  %v380_v19 = vmul.bf16 %v661_v17, %v365_v12  ;;  %v381_v20 = vmul.bf16 %v661_v17, %v366_v14  ;;  %v378_v21 = vmul.bf16 %v661_v17, %v363_v15  ;;  %v379_v22 = vmul.bf16 %v661_v17, %v364_v16 }
  0x19   : > { %480 = vperm.xlu1 %718, %v472_v27  }
  0x1a   : > { %v664_v23 = vcombine.low %v380_v19, %v381_v20  ;;  %v663_v24 = vcombine.low %v378_v21, %v379_v22 }
  0x1c   : > { %561 = vperm.xlu0 %717, %v558_v18   ;;  %677 = vmatpush3.bf16.msra.mxu0 %v664_v23 }
  0x1d   : > { %678 = vmatprep.subr.bf16.mxu0 %v745_v2  ;;  %546 = vperm.xlu1 %718, %v538_v28  }
  0x20   : > { %679 = vmatpush3.bf16.msra.mxu0 %v663_v24 }
  0x23   : > { %681 = vmatmul.mubr.msk.bf16.vlgmr.msra.gmra.mxu0 %vm413_vm1, %v719_v25 }
  0x8b   : > { %v389_v29 = vpop.permute.xlu0 %388 }
  0x8f   : > { %v394_v33 = vpop.permute.xlu0 %393  ;;  %v476_v44 = vpop.permute.xlu1 %475 }
  0x93   : > { %v542_v56 = vpop.permute.xlu0 %541 }
  0x94   : > { %v481_v49 = vpop.permute.xlu1 %480 }
  0x97   : > { %v562_v1 = vpop.permute.xlu0 %561 }
  0x98   : > { %v547_v57 = vpop.permute.xlu1 %546  ;;  %v567_v3 = vrot.slane %v562_v1, %v831_v9 }
  0xe3   : > { %v451_v30 = vpop.f32.mrf.mxu0 }
  0xe4   : > { %v452_v31 = vadd.f32 %v451_v30, %v389_v29 }
  0xe5   : > { %v682_v32 = vpop.f32.mrf.mxu0 }
  0xe6   : > { %v458_v35 = vmax.f32 %v452_v31, 0.0 }
  0xe7   : > { %v454_v34 = vpop.f32.mrf.mxu0 }
  0xe8   : > { %v455_v37 = vadd.f32 %v454_v34, %v394_v33  ;;  %v466_v40 = vmul.f32 %v464_v36, %v458_v35 }
  0xe9   : > { %v683_v38 = vpop.f32.mrf.mxu0 }
  0xea   : > { %v459_v39 = vmax.f32 %v455_v37, 0.0 }
  0xec   : > { %v467_v41 = vmul.f32 %v464_v36, %v459_v39 }
  0xee   : > { %v470_v42 = vpack.c.bf16 %v467_v41, %v466_v40 }
  0xf0   : > { %685 = vmatpush3.bf16.msra.mxu1 %v470_v42 }
  0xf3   : > { %687 = vmatmul.mubr.msk.bf16.vlgmr.msra.gmra.mxu1 %vm488_vm2, %v720_v43 }
 0x1b3   : > { %v526_v45 = vpop.f32.mrf.mxu1 }
 0x1b4   : > { %v527_v46 = vadd.f32 %v526_v45, %v476_v44 }
 0x1b5   : > { %v688_v47 = vpop.f32.mrf.mxu1 }
 0x1b6   : > { %v533_v48 = vmax.f32 %v527_v46, 0.0 }
 0x1b7   : > { %v529_v50 = vpop.f32.mrf.mxu1 }
 0x1b8   : > { %v530_v51 = vadd.f32 %v529_v50, %v481_v49  ;;  %v535_v53 = vmul.f32 %v533_v48, %v464_v36 }
 0x1b9   : > { %v689_v52 = vpop.f32.mrf.mxu1 }
 0x1ba   : > { %v534_v54 = vmax.f32 %v530_v51, 0.0  ;;  %v549_v58 = vmul.f32 %v542_v56, %v535_v53 }
 0x1bc   : > { %v536_v55 = vmul.f32 %v534_v54, %v464_v36 }
 0x1be   : > { %v550_v59 = vmul.f32 %v547_v57, %v536_v55 }
 0x1c0   : > { %v551_v60 = vadd.f32 %v550_v59, %v549_v58 }
 0x1c2   : > { %v552_v61 = vrot.slane %v551_v60, 4 }
 0x1c4   : > { %v553_v62 = vadd.f32 %v552_v61, %v551_v60 }
 0x1c6   : > { %v554_v63 = vrot.slane %v553_v62, 2 }
 0x1c8   : > { %v555_v0 = vadd.f32 %v554_v63, %v553_v62 }
 0x1ca   : > { %v556_v2 = vrot.slane %v555_v0, 1 }
 0x1cc   : > { %v557_v4 = vadd.f32 %v556_v2, %v555_v0 }
 0x1ce   : > { %v568_v5 = vadd.f32 %v567_v3, %v557_v4 }
 0x1d0   : > { %v569_v6 = vmul.f32 %v568_v5, %v827_v7 }
 0x1d2   : > { %570 = vst [vmem:[%s359_s16] sm:$0x1] %v569_v6 }
 0x1d3 PF: > { %s20_s9 = sadd.s32 1, %s743_s9   ;;  %s881_s29 = smov %s739_s30 }
 0x1d4   : > { %p17_p5 = scmp.ge.s32.totalorder %s20_s9, 4   ;;  %s882_s30 = smov %s884_s7 }
 0x1d6   :  { %19 = sbr.rel (!%p17_p5) target bundleno = 3 (0x3), region = 85 }

// kernel: reverse
= control target key start
LH: loop header
LB: loop body
LE: loop exit
PB: predicated region body
PF: predicated region fallthrough
CT: control target
= control target key end

     0   :  { %s474_s0 = inlined_call_operand.vmem [shape: bf16[2,32,16], index: 0, kind: input, shape index: {}]   ;;  %s475_s1 = inlined_call_operand.vmem [shape: bf16[2,32,16], index: 1, kind: output, shape index: {}]  }
   0x1   :  { %v18_v0 = vld [vmem:[%s474_s0] sm:$0xff]   ;;  %v22_v1 = vld [vmem:[%s474_s0 + $0x8] sm:$0xff]   ;;  %v26_v2 = vld [vmem:[%s474_s0 + $0x10] sm:$0xff]  }
   0x2   :  { %19 = vst [vmem:[#allocation1] sm:$0xff] %v18_v0   ;;  %23 = vst [vmem:[#allocation1 + $0x8] sm:$0xff] %v22_v1   ;;  %v30_v3 = vld [vmem:[%s474_s0 + $0x18] sm:$0xff]  }
   0x3   :  { %27 = vst [vmem:[#allocation1 + $0x10] sm:$0xff] %v26_v2   ;;  %31 = vst [vmem:[#allocation1 + $0x18] sm:$0xff] %v30_v3  }
   0x9   :  { %v413_v5 = vld [vmem:[#allocation1 + $0x8] sm:$0xff]   ;;  %v417_v6 = vld [vmem:[#allocation1] sm:$0xff]  }
   0xa   :  { %v409_v4 = vld [vmem:[#allocation1 + $0x10] sm:$0xff]   ;;  %v405_v7 = vld [vmem:[#allocation1 + $0x18] sm:$0xff]   ;;  %v414_v10 = vunpack.c.l.bf16 %v413_v5  ;;  %v415_v11 = vunpack.c.h.bf16 %v413_v5  ;;  %v418_v14 = vunpack.c.l.bf16 %v417_v6  ;;  %v419_v15 = vunpack.c.h.bf16 %v417_v6 }
   0xb   :  { %v410_v8 = vunpack.c.l.bf16 %v409_v4  ;;  %v411_v9 = vunpack.c.h.bf16 %v409_v4  ;;  %v406_v12 = vunpack.c.l.bf16 %v405_v7  ;;  %v407_v13 = vunpack.c.h.bf16 %v405_v7 }
   0xc   :  { %154 = vst [vmem:[#allocation0 + $0x18] sm:$0xff] %v415_v11  ;;  %170 = vst [vmem:[#allocation0 + $0x10] sm:$0xff] %v414_v10 }
   0xd   :  { %122 = vst [vmem:[#allocation0 + $0x28] sm:$0xff] %v411_v9  ;;  %138 = vst [vmem:[#allocation0 + $0x20] sm:$0xff] %v410_v8 }
   0xe   :  { %90 = vst [vmem:[#allocation0 + $0x38] sm:$0xff] %v407_v13  ;;  %106 = vst [vmem:[#allocation0 + $0x30] sm:$0xff] %v406_v12 }
   0xf   :  { %185 = vst [vmem:[#allocation0 + $0x8] sm:$0xff] %v419_v15  ;;  %198 = vst [vmem:[#allocation0] sm:$0xff] %v418_v14 }
  0x13   :  { %v201_v16 = vld [vmem:[#allocation0 + $0x1f] ss:$-1 sm:$0xff]  ;;  %v206_v17 = vld [vmem:[#allocation0 + $0x17] ss:$-1 sm:$0xff] }
  0x14   :  { %v231_v18 = vld [vmem:[#allocation0 + $0x2f] ss:$-1 sm:$0xff]  ;;  %v423_v22 = vpack.c.bf16 %v206_v17, %v201_v16  ;;  %v235_v24 = vld [vmem:[#allocation0 + $0x27] ss:$-1 sm:$0xff] }
  0x15   :  { %v221_v21 = vld [vmem:[#allocation0 + $0x3f] ss:$-1 sm:$0xff]  ;;  %v226_v23 = vld [vmem:[#allocation0 + $0x37] ss:$-1 sm:$0xff]  ;;  %v438_v27 = vpack.c.bf16 %v235_v24, %v231_v18 }
  0x16   :  { %v211_v19 = vld [vmem:[#allocation0 + $0xf] ss:$-1 sm:$0xff]  ;;  %v215_v20 = vld [vmem:[#allocation0 + $0x7] ss:$-1 sm:$0xff]  ;;  %424 = vst [vmem:[#allocation3] sm:$0xff] %v423_v22   ;;  %v433_v26 = vpack.c.bf16 %v226_v23, %v221_v21 }
  0x17   :  { %v428_v25 = vpack.c.bf16 %v215_v20, %v211_v19  ;;  %439 = vst [vmem:[#allocation3 + $0x18] sm:$0xff] %v438_v27  }
  0x18   :  { %434 = vst [vmem:[#allocation3 + $0x10] sm:$0xff] %v433_v26  }
  0x19   :  { %429 = vst [vmem:[#allocation3 + $0x8] sm:$0xff] %v428_v25  }
  0x1d   :  { %v318_v28 = vld [vmem:[#allocation3] sm:$0xff]  }
  0x1e   :  { %319 = vst [vmem:[%s475_s1] sm:$0xff] %v318_v28   ;;  %v330_v31 = vld [vmem:[#allocation3 + $0x18] sm:$0xff]  }
  0x1f   :  { %v326_v30 = vld [vmem:[#allocation3 + $0x10] sm:$0xff]   ;;  %331 = vst [vmem:[%s475_s1 + $0x18] sm:$0xff] %v330_v31  }
  0x20   :  { %v322_v29 = vld [vmem:[#allocation3 + $0x8] sm:$0xff]   ;;  %327 = vst [vmem:[%s475_s1 + $0x10] sm:$0xff] %v326_v30  }
  0x21   :  { %323 = vst [vmem:[%s475_s1 + $0x8] sm:$0xff] %v322_v29  }

// kernel: _lambda_.13
= control target key start
LH: loop header
LB: loop body
LE: loop exit
PB: predicated region body
PF: predicated region fallthrough
CT: control target
= control target key end

     0   :  { %s1442_s0 = inlined_call_operand.vmem [shape: s32[2], index: 0, kind: input, shape index: {}]   ;;  %s1443_s2 = inlined_call_operand.vmem [shape: bf16[2,32,128], index: 2, kind: input, shape index: {}]   ;;  %s1444_s3 = inlined_call_operand.vmem [shape: f32[2,64,128], index: 3, kind: input, shape index: {}]   ;;  %s1445_s4 = inlined_call_operand.vmem [shape: f32[2,1,128], index: 4, kind: output, shape index: {0}]   ;;  %s1446_s5 = inlined_call_operand.vmem [shape: f32[2,64,128], index: 5, kind: output, shape index: {1}]   ;;  %s1447_s1 = inlined_call_operand.vmem [shape: s32[2], index: 1, kind: input, shape index: {}]  }
   0x1   :  { %s11_s20 = sshll.u32 %s1442_s0, 4  ;;  %s15_s23 = sshll.u32 %s1447_s1, 4  ;;  %s12_s20 = int_to_ptr.vmem [resolvable:$true] %s11_s20  ;;  %s16_s23 = int_to_ptr.vmem [resolvable:$true] %s15_s23 }
   0x2   :  { %s1144_s24 = scalar_lea.vmem %s12_s20, 16  ;;  %p1149_p1 = scmp.lt.s32.totalorder %s12_s20, %s12_s20 }
   0x3   :  { %p1145_p0 = scmp.ne.s32.totalorder %s12_s20, %s1144_s24  ;;  %p1150_p2 = scmp.lt.s32.totalorder %s1144_s24, %s1144_s24 }
   0x5   :  { %p1151_p3 = por %p1150_p2, %p1149_p1 }
   0x7   :  { %p1152_p4 = pnand %p1151_p3, %p1145_p0 }
   0x9   :  { %1155 = shalt.err (!%p1152_p4)  }
   0xa   :  { %s1218_s25 = smov [#allocation4]   ;;  %s1156_s26 = scalar_lea.vmem %s16_s23, 16 }
   0xb   :  { %14 = dma.vmem_to_smem %s12_s20, 16, %s1218_s25, [#allocation3] }
   0xc   :  { %p1157_p5 = scmp.ne.s32.totalorder %s16_s23, %s1156_s26  ;;  %p1161_p6 = scmp.lt.s32.totalorder %s16_s23, %s16_s23 }
   0xd   :  { %p1162_p7 = scmp.lt.s32.totalorder %s1156_s26, %s1156_s26 }
   0xf   :  { %p1163_p8 = por %p1162_p7, %p1161_p6 }
  0x11   :  { %p1164_p9 = pnand %p1163_p8, %p1157_p5 }
  0x13   :  { %1167 = shalt.err (!%p1164_p9)  }
  0x14   :  { %s1219_s0 = smov [#allocation5]  }
  0x15   :  { %18 = dma.vmem_to_smem %s16_s23, 16, %s1219_s0, [#allocation3] }
  0x16   :  { %1192 = dma.done.wait [#allocation3], 32 }
  0x17   :  { %1193 = vsyncadd [#allocation3], 4294967264 }
  0x18   :  { %20 = sfence }
  0x19   :  { %s1259_s1 = smov 0  }
  0x1a LB: > { %s901_s27 = sadd.s32 4294967295, %s1196_s1   ;;  %p905_p10 = scmp.ge.s32.totalorder %s1196_s1, 1  ;;  %s1196_s1 = sphi %s1259_s1, %s26_s1  }
  0x1b   : > { %p162_p11 = scmp.lt.s32.totalorder %s1196_s1, 3 }
  0x1d   : > { %p163_p12 = pnand %p905_p10, %p162_p11 }
  0x1e   : > { %p194_p13 = scmp.lt.s32.totalorder (!%p163_p12), %s901_s27, 1  ;;  %s1267_s28 = sld [smem:[#allocation4 + %s901_s27]] (!%p163_p12) }
  0x1f   : > { %166 = sbr.rel (%p163_p12) target bundleno = 1007 (0x3ef), region = 28  ;;  %s1269_s29 = sld [smem:[#allocation5 + %s901_s27]] (!%p163_p12) }
  0x24   : > { %s1450_s27 = smov (!%p194_p13, %s901_s27), 1  ;;  %vm320_vm0 = vcmask 523264  }
  0x25   : > { %s938_s30 = sshll.u32 %s1450_s27, 4  ;;  %s939_s6 = sshll.u32 %s1450_s27, 6 }
  0x26   : > { %s198_s9 = scalar_lea.vmem %s1443_s2, %s938_s30  ;;  %s1281_s12 = scalar_lea.vmem %s1444_s3, %s939_s6 }
  0x27   : > { %s206_s15 = scalar_lea.vmem %s1445_s4, %s1450_s27  ;;  %s1290_s18 = scalar_lea.vmem %s1446_s5, %s939_s6  ;;  %v942_v0 = vld [vmem:[%s198_s9] sm:$0xff]   ;;  %v1296_v2 = vld [vmem:[%s1281_s12 + $0x28] sm:$0xff]  ;;  %v1299_v4 = vld [vmem:[%s1281_s12 + $0x30] sm:$0xff] }
  0x28   : > { %v1293_v1 = vld [vmem:[%s1281_s12 + $0x20] sm:$0xff]  ;;  %v943_v3 = vunpack.c.l.bf16 %v942_v0  ;;  %v1302_v5 = vld [vmem:[%s1281_s12 + $0x38] sm:$0xff]  ;;  %v231_v7 = vmul.f32 -2.0, %v1296_v2  ;;  %v232_v9 = vmul.f32 -2.0, %v1299_v4  ;;  %v243_v11 = vsub.f32 -0.9189385, %v1296_v2 }
  0x29   : > { %v230_v6 = vmul.f32 -2.0, %v1293_v1  ;;  %v242_v8 = vsub.f32 -0.9189385, %v1293_v1  ;;  %v233_v10 = vmul.f32 -2.0, %v1302_v5  ;;  %v244_v12 = vsub.f32 -0.9189385, %v1299_v4 }
  0x2a   : > { %v236_v14 = vmul.f32 1.442695, %v231_v7  ;;  %v245_v15 = vsub.f32 -0.9189385, %v1302_v5  ;;  %v944_v16 = vunpack.c.h.bf16 %v942_v0  ;;  %v238_v17 = vmul.f32 1.442695, %v232_v9 }
  0x2b   : > { %v234_v13 = vmul.f32 1.442695, %v230_v6  ;;  %v240_v18 = vmul.f32 1.442695, %v233_v10  ;;  %v246_v19 = vadd.f32 %v243_v11, %v242_v8  ;;  %v276_v20 = vmul.f32 -0.5, %v943_v3  ;;  %v949_v21 = vld [vmem:[%s198_s9 + $0x8] sm:$0xff]  }
  0x2c   : > { %v277_v22 = vmul.f32 -0.5, %v944_v16  ;;  %v947_v23 = vunpack.c.l.bf16 %v949_v21  ;;  %v948_v26 = vunpack.c.h.bf16 %v949_v21  ;;  %v1315_v30 = vld [vmem:[%s1281_s12] sm:$0xff]  ;;  %v1318_v31 = vld [vmem:[%s1281_s12 + $0x8] sm:$0xff]  ;;  %v1322_v35 = vld [vmem:[%s1281_s12 + $0x10] sm:$0xff]  ;;  %p928_p0 = scmp.le.s32.totalorder %s1269_s29, 0 }
  0x2d   : > { %1136 = vpow2.f32 %v234_v13  ;;  %v247_v24 = vadd.f32 %v246_v19, %v244_v12  ;;  %v280_v25 = vmul.f32 %v943_v3, %v276_v20  ;;  %v255_v32 = vmul.f32 -0.5, %v1315_v30  ;;  %v1326_v37 = vld [vmem:[%s1281_s12 + $0x18] sm:$0xff]  ;;  %s1379_s19 = smov (!%p928_p0), 0  }
  0x2e   : > { %1138 = vpow2.f32 %v236_v14  ;;  %v281_v28 = vmul.f32 %v944_v16, %v277_v22  ;;  %v278_v29 = vmul.f32 -0.5, %v947_v23  ;;  %v279_v34 = vmul.f32 -0.5, %v948_v26 }
  0x2f   : > { %1140 = vpow2.f32 %v238_v17  ;;  %v1312_v27 = vadd.f32 %v247_v24, %v245_v15  ;;  %288 = vxpose.xlu0.b32.start [1/8] (short) %v280_v25, 128  ;;  %v256_v36 = vmul.f32 -0.5, %v1318_v31  ;;  %v257_v38 = vmul.f32 -0.5, %v1322_v35 }
  0x30   : > { %1142 = vpow2.f32 %v240_v18  ;;  %v282_v33 = vmul.f32 %v947_v23, %v278_v29  ;;  %v258_v39 = vmul.f32 -0.5, %v1326_v37  ;;  %v259_v40 = vmul.f32 %v255_v32, %v1315_v30 }
  0x31   : > { %v283_v41 = vmul.f32 %v948_v26, %v279_v34  ;;  %v260_v42 = vmul.f32 %v256_v36, %v1318_v31  ;;  %v261_v43 = vmul.f32 %v257_v38, %v1322_v35  ;;  %v249_v18 = vrot.slane %v1312_v27, 4 }
  0x32   : > { %v262_v45 = vmul.f32 %v258_v39, %v1326_v37 }
  0x33   : > { %289 = vxpose.xlu0.b32.cont [2/8] (short) %v281_v28, 128  ;;  %v250_v20 = vadd.f32 %v249_v18, %v1312_v27 }
  0x35   : > { %v251_v22 = vrot.slane %v250_v20, 2 }
  0x37   : > { %290 = vxpose.xlu0.b32.cont [3/8] (short) %v282_v33, 128  ;;  %v252_v24 = vadd.f32 %v251_v22, %v250_v20 }
  0x3a   : > { %v1137_v44 = vpop.eup %1136 }
  0x3b   : > { %v1139_v46 = vpop.eup %1138  ;;  %v263_v47 = vmul.f32 %v1137_v44, %v259_v40  ;;  %291 = vxpose.xlu0.b32.cont [4/8] (short) %v283_v41, 128  ;;  %v284_v59 = vmul.f32 %v1137_v44, %v1315_v30 }
  0x3c   : > { %v1141_v48 = vpop.eup %1140  ;;  %v264_v49 = vmul.f32 %v1139_v46, %v260_v42  ;;  %v285_v56 = vmul.f32 %v1139_v46, %v1318_v31 }
  0x3d   : > { %v1143_v50 = vpop.eup %1142  ;;  %v265_v51 = vmul.f32 %v1141_v48, %v261_v43  ;;  %v286_v54 = vmul.f32 %v1141_v48, %v1322_v35 }
  0x3e   : > { %v266_v52 = vmul.f32 %v1143_v50, %v262_v45  ;;  %v287_v53 = vmul.f32 %v1143_v50, %v1326_v37  ;;  %v267_v55 = vadd.f32 %v264_v49, %v263_v47 }
  0x3f   : > { %292 = vxpose.xlu0.b32.cont [5/8] (short) %v943_v3, 128 }
  0x40   : > { %998 = vmatprep.subr.mxu0 %v287_v53  ;;  %v268_v57 = vadd.f32 %v267_v55, %v265_v51 }
  0x41   : > { %999 = vmatpush3.msra.mxu0 %v287_v53 }
  0x42   : > { %1000 = vmatprep.subr.mxu0 %v286_v54  ;;  %v269_v58 = vadd.f32 %v268_v57, %v266_v52 }
  0x43   : > { %1001 = vmatpush3.msra.mxu0 %v286_v54  ;;  %293 = vxpose.xlu0.b32.cont [6/8] (short) %v944_v16, 128  ;;  %v546_v16 = vlaneseq }
  0x44   : > { %1002 = vmatprep.subr.mxu0 %v285_v56  ;;  %v270_v19 = vrot.slane %v269_v58, 4 }
  0x45   : > { %1003 = vmatpush3.msra.mxu0 %v285_v56  ;;  %v1354_v17 = vand.u32 127, %v546_v16 }
  0x46   : > { %1004 = vmatprep.subr.mxu0 %v284_v59  ;;  %v271_v21 = vadd.f32 %v270_v19, %v269_v58 }
  0x47   : > { %1005 = vmatpush3.msra.mxu0 %v284_v59  ;;  %294 = vxpose.xlu0.b32.cont [7/8] (short) %v947_v23, 128 }
  0x48   : > { %1006 = vmatprep.subr.mxu0 %v1143_v50  ;;  %v272_v23 = vrot.slane %v271_v21, 2 }
  0x49   : > { %1007 = vmatpush3.msra.mxu0 %v1143_v50 }
  0x4a   : > { %1008 = vmatprep.subr.mxu0 %v1141_v48  ;;  %v273_v25 = vadd.f32 %v272_v23, %v271_v21 }
  0x4b   : > { %1009 = vmatpush3.msra.mxu0 %v1141_v48  ;;  %295 = vxpose.xlu0.b32.end [8/8] (short) %v948_v26, 128  ;;  %v253_v26 = vrot.slane %v252_v24, 1 }
  0x4c   : > { %1010 = vmatprep.subr.mxu0 %v1139_v46  ;;  %v274_v28 = vrot.slane %v273_v25, 1 }
  0x4d   : > { %1011 = vmatpush3.msra.mxu0 %v1139_v46  ;;  %v254_v29 = vadd.f32 %v253_v26, %v252_v24 }
  0x4e   : > { %1012 = vmatprep.subr.mxu0 %v1137_v44  ;;  %v1358_v32 = vadd.f32 %v274_v28, %v273_v25 }
  0x4f   : > { %1013 = vmatpush3.msra.mxu0 %v1137_v44 }
  0xab   : > { %v304_v60 = vpop.trf.xlu0 }
  0xac   : > { %1014 = vmatprep.mubr.msk.f32.mxu0 %vm320_vm0, %v304_v60 }
  0xaf   : > { %v305_v61 = vpop.trf.xlu0 }
  0xb0   : > { %1015 = vmatmul.mubr.msk.f32.vlgmr.msra.gmra.mxu0 %vm320_vm0, %v305_v61 }
  0xb3   : > { %v306_v62 = vpop.trf.xlu0 }
  0xb4   : > { %1017 = vmatprep.mubr.msk.f32.mxu0 %vm320_vm0, %v306_v62 }
  0xb7   : > { %v307_v63 = vpop.trf.xlu0 }
  0xb8   : > { %1018 = vmatmul.mubr.msk.f32.gmra.mxu0 %vm320_vm0, %v307_v63 }
  0xbb   : > { %v308_v0 = vpop.trf.xlu0 }
  0xbc   : > { %1020 = vmatprep.mubr.msk.f32.mxu0 %vm320_vm0, %v308_v0 }
  0xbf   : > { %v309_v3 = vpop.trf.xlu0 }
  0xc0   : > { %1021 = vmatmul.mubr.msk.f32.gmra.mxu0 %vm320_vm0, %v309_v3 }
  0xc3   : > { %v310_v6 = vpop.trf.xlu0 }
  0xc4   : > { %1023 = vmatprep.mubr.msk.f32.mxu0 %vm320_vm0, %v310_v6 }
  0xc7   : > { %v311_v7 = vpop.trf.xlu0 }
  0xc8   : > { %1024 = vmatmul.mubr.msk.f32.gmra.mxu0 %vm320_vm0, %v311_v7 }
  0xcb   : > { %v312_v8 = vpop.trf.xlu0 }
  0xcc   : > { %1026 = vmatprep.mubr.msk.f32.mxu0 %vm320_vm0, %v312_v8 }
  0xcf   : > { %v313_v9 = vpop.trf.xlu0 }
  0xd0   : > { %1027 = vmatmul.mubr.msk.f32.gmra.mxu0 %vm320_vm0, %v313_v9 }
  0xd3   : > { %v314_v10 = vpop.trf.xlu0 }
  0xd4   : > { %1029 = vmatprep.mubr.msk.f32.mxu0 %vm320_vm0, %v314_v10 }
  0xd7   : > { %v315_v11 = vpop.trf.xlu0 }
  0xd8   : > { %1030 = vmatmul.mubr.msk.f32.gmra.mxu0 %vm320_vm0, %v315_v11 }
  0xdb   : > { %v316_v12 = vpop.trf.xlu0 }
  0xdc   : > { %1032 = vmatprep.mubr.msk.f32.mxu0 %vm320_vm0, %v316_v12 }
  0xdf   : > { %v317_v13 = vpop.trf.xlu0 }
  0xe0   : > { %1033 = vmatmul.mubr.msk.f32.gmra.mxu0 %vm320_vm0, %v317_v13 }
  0xe3   : > { %v318_v14 = vpop.trf.xlu0 }
  0xe4   : > { %1035 = vmatprep.mubr.msk.f32.mxu0 %vm320_vm0, %v318_v14 }
  0xe7   : > { %v319_v15 = vpop.trf.xlu0 }
  0xe8   : > { %1036 = vmatmul.mubr.msk.f32.gmra.mxu0 %vm320_vm0, %v319_v15 }
 0x170   : > { %v1016_v33 = vpop.f32.mrf.mxu0 }
 0x171   : > { %v441_v34 = vadd.f32 %v1016_v33, %v254_v29 }
 0x172   : > { %v435_v36 = vpop.f32.mrf.mxu0 }
 0x173   : > { %v515_v38 = vadd.f32 %v441_v34, %v1358_v32  ;;  %v436_v39 = vadd.f32 %v435_v36, %v254_v29 }
 0x175   : > { %531 = vst [vmem:[#allocation2 + $0x8] sm:$0xff] %v515_v38  ;;  %v514_v40 = vadd.f32 %v436_v39, %v1358_v32 }
 0x177   : > { %530 = vst [vmem:[#allocation2] sm:$0xff] %v514_v40 }
 0x178   : > { %v1019_v27 = vpop.f32.mrf.mxu0 }
 0x179   : > { %v451_v41 = vadd.f32 %v1019_v27, %v254_v29 }
 0x17a   : > { %v445_v42 = vpop.f32.mrf.mxu0 }
 0x17b   : > { %v517_v43 = vadd.f32 %v451_v41, %v1358_v32  ;;  %v446_v44 = vadd.f32 %v445_v42, %v254_v29 }
 0x17d   : > { %533 = vst [vmem:[#allocation2 + $0x18] sm:$0xff] %v517_v43  ;;  %v516_v45 = vadd.f32 %v446_v44, %v1358_v32 }
 0x17f   : > { %532 = vst [vmem:[#allocation2 + $0x10] sm:$0xff] %v516_v45 }
 0x180   : > { %v1022_v46 = vpop.f32.mrf.mxu0 }
 0x181   : > { %v461_v47 = vadd.f32 %v1022_v46, %v254_v29 }
 0x182   : > { %v455_v48 = vpop.f32.mrf.mxu0 }
 0x183   : > { %v519_v49 = vadd.f32 %v461_v47, %v1358_v32  ;;  %v456_v50 = vadd.f32 %v455_v48, %v254_v29 }
 0x185   : > { %535 = vst [vmem:[#allocation2 + $0x28] sm:$0xff] %v519_v49  ;;  %v518_v51 = vadd.f32 %v456_v50, %v1358_v32 }
 0x187   : > { %534 = vst [vmem:[#allocation2 + $0x20] sm:$0xff] %v518_v51 }
 0x188   : > { %v1025_v52 = vpop.f32.mrf.mxu0 }
 0x189   : > { %v471_v53 = vadd.f32 %v1025_v52, %v254_v29 }
 0x18a   : > { %v465_v54 = vpop.f32.mrf.mxu0 }
 0x18b   : > { %v521_v55 = vadd.f32 %v471_v53, %v1358_v32  ;;  %v466_v56 = vadd.f32 %v465_v54, %v254_v29 }
 0x18d   : > { %537 = vst [vmem:[#allocation2 + $0x38] sm:$0xff] %v521_v55  ;;  %v520_v57 = vadd.f32 %v466_v56, %v1358_v32 }
 0x18f   : > { %536 = vst [vmem:[#allocation2 + $0x30] sm:$0xff] %v520_v57 }
 0x190   : > { %v1028_v58 = vpop.f32.mrf.mxu0 }
 0x191   : > { %v481_v59 = vadd.f32 %v1028_v58, %v254_v29 }
 0x192   : > { %v475_v60 = vpop.f32.mrf.mxu0 }
 0x193   : > { %v523_v61 = vadd.f32 %v481_v59, %v1358_v32  ;;  %v476_v62 = vadd.f32 %v475_v60, %v254_v29 }
 0x195   : > { %539 = vst [vmem:[#allocation2 + $0x48] sm:$0xff] %v523_v61  ;;  %v522_v63 = vadd.f32 %v476_v62, %v1358_v32 }
 0x197   : > { %538 = vst [vmem:[#allocation2 + $0x40] sm:$0xff] %v522_v63 }
 0x198   : > { %v1031_v0 = vpop.f32.mrf.mxu0 }
 0x199   : > { %v491_v3 = vadd.f32 %v1031_v0, %v254_v29 }
 0x19a   : > { %v485_v6 = vpop.f32.mrf.mxu0 }
 0x19b   : > { %v525_v7 = vadd.f32 %v491_v3, %v1358_v32  ;;  %v486_v8 = vadd.f32 %v485_v6, %v254_v29 }
 0x19d   : > { %541 = vst [vmem:[#allocation2 + $0x58] sm:$0xff] %v525_v7  ;;  %v524_v9 = vadd.f32 %v486_v8, %v1358_v32 }
 0x19f   : > { %540 = vst [vmem:[#allocation2 + $0x50] sm:$0xff] %v524_v9 }
 0x1a0   : > { %v1034_v10 = vpop.f32.mrf.mxu0 }
 0x1a1   : > { %v501_v11 = vadd.f32 %v1034_v10, %v254_v29 }
 0x1a2   : > { %v495_v12 = vpop.f32.mrf.mxu0 }
 0x1a3   : > { %v527_v13 = vadd.f32 %v501_v11, %v1358_v32  ;;  %v496_v14 = vadd.f32 %v495_v12, %v254_v29 }
 0x1a5   : > { %543 = vst [vmem:[#allocation2 + $0x68] sm:$0xff] %v527_v13  ;;  %v526_v15 = vadd.f32 %v496_v14, %v1358_v32 }
 0x1a7   : > { %542 = vst [vmem:[#allocation2 + $0x60] sm:$0xff] %v526_v15 }
 0x1a8   : > { %v1037_v16 = vpop.f32.mrf.mxu0 }
 0x1a9   : > { %v511_v18 = vadd.f32 %v1037_v16, %v254_v29 }
 0x1aa   : > { %v505_v19 = vpop.f32.mrf.mxu0 }
 0x1ab   : > { %v529_v20 = vadd.f32 %v511_v18, %v1358_v32  ;;  %v506_v21 = vadd.f32 %v505_v19, %v254_v29  ;;  %848 = sbr.rel (%p928_p0) target bundleno = 556 (0x22c), region = 92 }
 0x1ad   : > { %545 = vst [vmem:[#allocation2 + $0x78] sm:$0xff] %v529_v20  ;;  %v528_v22 = vadd.f32 %v506_v21, %v1358_v32 }
 0x1af   : > { %544 = vst [vmem:[#allocation2 + $0x70] sm:$0xff] %v528_v22 }
 0x1b0   : > { %v1198_v23 = vmov -1e+15  }
 0x1b1 LB: >> { %s1220_s20 = smov 1   ;;  %s569_s21 = sadd.s32 %s1204_s19, %s1267_s28  ;;  %v557_v24 = vstv %s1204_s19  ;;  %vm562_vm2 = vcmp.eq.s32.totalorder %v1354_v17, 0  ;;  %s1204_s19 = sphi %s1379_s19, %s1448_s19   ;;  %v1200_v23 = vphi %v1198_v23, %v581_v23  }
 0x1b2   : >> { %560 = vrot.lane.b32.xlu0 %v1200_v23, %s1220_s20  ;;  %s575_s22 = sadd.s32 1, %s1204_s19   ;;  %s570_s23 = ssub.s32 %s569_s21, %s1269_s29  ;;  %vm558_vm1 = vcmp.eq.s32.totalorder %v1354_v17, %v557_v24 }
 0x1b3   : >> { %p576_p1 = scmp.lt.s32.totalorder %s1267_s28, %s575_s22  ;;  %p571_p2 = scmp.gt.s32.totalorder %s570_s23, 0  ;;  %v559_v29 = vsel %vm558_vm1, -1e+15, %v1200_v23 }
 0x1b4   : >> { %p563_p3 = scmp.eq.s32.totalorder %s1204_s19, 0  ;;  %s555_s26 = scalar_lea.vmem [#allocation2], %s1204_s19 }
 0x1b5   : >> { %s577_s24 = scalar_select %p576_p1, %s1267_s28, %s575_s22 }
 0x1b6   : >> { %s1452_s23 = smov (!%p571_p2, %s570_s23), 0  ;;  %v556_v33 = vld [vmem:[%s555_s26] sm:$0x1]  ;;  %p550_p4 = scmp.ge.s32.totalorder %s575_s22, %s1269_s29 }
 0x1b7   : >> { %s564_s25 = scalar_select %p563_p3, 0.0, -1e+15  ;;  %v573_v25 = vstv %s1452_s23  ;;  %v578_v26 = vstv %s577_s24 }
 0x1b8   : >> { %vm574_vm3 = vcmp.ge.s32.totalorder %v1354_v17, %v573_v25  ;;  %vm579_vm4 = vcmp.lt.s32.totalorder %v1354_v17, %v578_v26  ;;  %s1448_s19 = smov %s575_s22 }
 0x1b9   : >> { %v565_v28 = vstv %s564_s25  ;;  %vm580_vm5 = vmand %vm574_vm3, %vm579_vm4 }
 0x224   : >> { %v561_v32 = vpop.permute.xlu0 %560 }
 0x225   : >> { %v566_v34 = vsel %vm562_vm2, %v565_v28, %v561_v32 }
 0x226   : >> { %v567_v36 = vmax.f32 %v559_v29, %v566_v34 }
 0x227   : > { %553 = sbr.rel (!%p550_p4) target bundleno = 433 (0x1b1), region = 98 }
 0x228   : >> { %v568_v38 = vadd.f32 %v567_v36, %v556_v33 }
 0x22a   : >> { %v581_v23 = vsel %vm580_vm5, %v568_v38, -1e+15  }
 0x22b   : >> { %582 = vst [vmem:[%s555_s26] sm:$0x1] %v581_v23 }
 0x22c PF: > { %s583_s0 = ssub.s32 128, %s1269_s29 }
 0x22d   : > { %p929_p5 = scmp.le.s32.totalorder %s583_s0, 0 }
 0x22e   : > { %s1206_s30 = smov (!%p929_p5), 0  }
 0x22f   : > { %855 = sbr.rel (%p929_p5) target bundleno = 572 (0x23c), region = 103 }
 0x234 LB: >> { %s590_s6 = sadd.s32 %s1208_s30, %s1269_s29  ;;  %v1221_v39 = vmov 0.0   ;;  %s587_s30 = sadd.s32 1, %s1208_s30   ;;  %s1208_s30 = sphi %s1206_s30, %s587_s30  }
 0x235   : >> { %s591_s7 = scalar_lea.vmem [#allocation2], %s590_s6  ;;  %p586_p6 = scmp.ge.s32.totalorder %s587_s30, %s583_s0 }
 0x236   : >> { %592 = vst [vmem:[%s591_s7] sm:$0x1] %v1221_v39 }
 0x237   : > { %589 = sbr.rel (!%p586_p6) target bundleno = 564 (0x234), region = 109 }
 0x23c PF: > { %s930_s8 = sadd.s32 4294967295, %s1267_s28  ;;  %861 = sbr.rel (%p928_p0) target bundleno = 734 (0x2de), region = 114 }
 0x23d   : > { %v594_v40 = vstv %s930_s8   ;;  %s1405_s9 = smov (!%p928_p0), 0  }
 0x241   : > { %v1210_v27 = vmov %v594_v40  }
 0x242 LB: >> { %s932_s10 = sadd.s32 4294967295, %s1269_s29  ;;  %v934_v41 = vadd.s32 4294967295, %v1212_v27  ;;  %vm609_vm6 = vcmp.eq.s32.totalorder %v1354_v17, %v1212_v27  ;;  %v1222_v42 = vmov 0.0   ;;  %vm611_vm8 = vcmask 1040384   ;;  %s1216_s9 = sphi %s1405_s9, %s598_s9   ;;  %v1212_v27 = vphi %v1210_v27, %v631_v27  }
 0x243   : >> { %s603_s11 = ssub.s32 %s932_s10, %s1216_s9  ;;  %v935_v43 = vsel %vm609_vm6, 1.0, %v1222_v42  ;;  %vm625_vm10 = vcmp.ne.s32.totalorder %v1212_v27, 0  ;;  %s598_s9 = sadd.s32 1, %s1216_s9  }
 0x244   : >> { %s933_s12 = sadd.s32 4294967295, %s603_s11  ;;  %vm616_vm7 = vcmp.eq.s32.totalorder %v1354_v17, %v934_v41  ;;  %s623_s13 = scalar_lea.vmem [#allocation2], %s603_s11  ;;  %v626_v50 = vstv %s603_s11 }
 0x245   : >> { %p605_p7 = scmp.gt.s32.totalorder %s933_s12, 0  ;;  %vm627_vm9 = vcmp.eq.s32.totalorder %v1212_v27, %v626_v50  ;;  %p597_p8 = scmp.ge.s32.totalorder %s598_s9, %s1269_s29 }
 0x247   : >> { %s1454_s12 = smov (!%p605_p7, %s933_s12), 0 }
 0x248   : >> { %s607_s28 = scalar_lea.vmem [#allocation2], %s1454_s12 }
 0x249   : >> { %v608_v44 = vld [vmem:[%s607_s28] sm:$0x1] }
 0x24a   : >> { %v610_v45 = vsel %vm609_vm6, %v608_v44, 0.0  ;;  %624 = vst [vmem:[%s623_s13] sm:$0x1] %v935_v43  ;;  %v617_v46 = vsel %vm616_vm7, %v608_v44, 0.0 }
 0x24b   : >> { %v612_v47 = vsel %vm611_vm8, %v610_v45, 0.0  ;;  %v618_v48 = vsel %vm611_vm8, %v617_v46, 0.0 }
 0x24c   : >> { %613 = vadd.xlane.f32.xlu0 %v612_v47 }
 0x250   : >> { %619 = vadd.xlane.f32.xlu0 %v618_v48 }
 0x2d5   : >> { %v614_v49 = vpop.xlane.xlu0 %613 }
 0x2d9   : >> { %v620_v51 = vpop.xlane.xlu0 %619  ;;  %600 = sbr.rel (!%p597_p8) target bundleno = 578 (0x242), region = 120 }
 0x2da   : >> { %vm628_vm11 = vcmp.lt.f32.partialorder %v614_v49, %v620_v51 }
 0x2db   : >> { %vm629_vm12 = vmor %vm627_vm9, %vm628_vm11 }
 0x2dc   : >> { %vm630_vm13 = vmand %vm625_vm10, %vm629_vm12 }
 0x2dd   : >> { %v631_v27 = vsel %vm630_vm13, %v934_v41, %v1212_v27  }
 0x2de PF: > { %v647_v52 = vld [vmem:[#allocation2 + $0x78] sm:$0xff]  ;;  %v646_v53 = vld [vmem:[#allocation2 + $0x70] sm:$0xff]  ;;  %1070 = vmatprep.mubr.f32.mxu1 %v1315_v30  ;;  %v645_v54 = vld [vmem:[#allocation2 + $0x68] sm:$0xff] }
 0x2df   : > { %1038 = vmatprep.subr.mxu1 %v647_v52  ;;  %v633_v55 = vld [vmem:[#allocation2 + $0x8] sm:$0xff]  ;;  %v632_v56 = vld [vmem:[#allocation2] sm:$0xff]  ;;  %v634_v58 = vld [vmem:[#allocation2 + $0x10] sm:$0xff] }
 0x2e0   : > { %1039 = vmatpush3.xpose.msra.mxu1 %v647_v52  ;;  %v648_v57 = vadd.f32 %v633_v55, %v632_v56  ;;  %v644_v59 = vld [vmem:[#allocation2 + $0x60] sm:$0xff]  ;;  %v635_v61 = vld [vmem:[#allocation2 + $0x18] sm:$0xff]  ;;  %v637_v30 = vld [vmem:[#allocation2 + $0x28] sm:$0xff] }
 0x2e1   : > { %1040 = vmatprep.subr.mxu1 %v646_v53  ;;  %v636_v17 = vld [vmem:[#allocation2 + $0x20] sm:$0xff]  ;;  %v643_v63 = vld [vmem:[#allocation2 + $0x58] sm:$0xff]  ;;  %v638_v6 = vld [vmem:[#allocation2 + $0x30] sm:$0xff] }
 0x2e2   : > { %v649_v60 = vadd.f32 %v648_v57, %v634_v58  ;;  %v642_v7 = vld [vmem:[#allocation2 + $0x50] sm:$0xff]  ;;  %v639_v9 = vld [vmem:[#allocation2 + $0x38] sm:$0xff]  ;;  %v640_v11 = vld [vmem:[#allocation2 + $0x40] sm:$0xff] }
 0x2e3   : > { %v641_v12 = vld [vmem:[#allocation2 + $0x48] sm:$0xff] }
 0x2e4   : > { %1041 = vmatpush3.xpose.msra.mxu1 %v646_v53  ;;  %v650_v62 = vadd.f32 %v649_v60, %v635_v61 }
 0x2e5   : > { %1042 = vmatprep.subr.mxu1 %v645_v54 }
 0x2e6   : > { %v651_v0 = vadd.f32 %v650_v62, %v636_v17 }
 0x2e8   : > { %1043 = vmatpush3.xpose.msra.mxu1 %v645_v54  ;;  %v652_v3 = vadd.f32 %v651_v0, %v637_v30 }
 0x2e9   : > { %1044 = vmatprep.subr.mxu1 %v644_v59 }
 0x2ea   : > { %v653_v8 = vadd.f32 %v652_v3, %v638_v6 }
 0x2ec   : > { %1045 = vmatpush3.xpose.msra.mxu1 %v644_v59  ;;  %v654_v10 = vadd.f32 %v653_v8, %v639_v9 }
 0x2ed   : > { %1046 = vmatprep.subr.mxu1 %v643_v63 }
 0x2ee   : > { %v655_v13 = vadd.f32 %v654_v10, %v640_v11 }
 0x2f0   : > { %1047 = vmatpush3.xpose.msra.mxu1 %v643_v63  ;;  %v656_v14 = vadd.f32 %v655_v13, %v641_v12 }
 0x2f1   : > { %1048 = vmatprep.subr.mxu1 %v642_v7 }
 0x2f2   : > { %v657_v15 = vadd.f32 %v656_v14, %v642_v7 }
 0x2f4   : > { %1049 = vmatpush3.xpose.msra.mxu1 %v642_v7  ;;  %v658_v16 = vadd.f32 %v657_v15, %v643_v63 }
 0x2f5   : > { %1050 = vmatprep.subr.mxu1 %v641_v12 }
 0x2f6   : > { %v659_v18 = vadd.f32 %v658_v16, %v644_v59 }
 0x2f8   : > { %1051 = vmatpush3.xpose.msra.mxu1 %v641_v12  ;;  %v660_v19 = vadd.f32 %v659_v18, %v645_v54 }
 0x2f9   : > { %1052 = vmatprep.subr.mxu1 %v640_v11 }
 0x2fa   : > { %v661_v20 = vadd.f32 %v660_v19, %v646_v53 }
 0x2fc   : > { %1053 = vmatpush3.xpose.msra.mxu1 %v640_v11  ;;  %v662_v21 = vadd.f32 %v661_v20, %v647_v52 }
 0x2fd   : > { %1054 = vmatprep.subr.mxu1 %v639_v9 }
 0x2fe   : > { %v663_v22 = vrot.slane %v662_v21, 4 }
 0x300   : > { %1055 = vmatpush3.xpose.msra.mxu1 %v639_v9  ;;  %v664_v23 = vadd.f32 %v663_v22, %v662_v21 }
 0x301   : > { %1056 = vmatprep.subr.mxu1 %v638_v6 }
 0x302   : > { %v665_v24 = vrot.slane %v664_v23, 2 }
 0x304   : > { %1057 = vmatpush3.xpose.msra.mxu1 %v638_v6  ;;  %v666_v25 = vadd.f32 %v665_v24, %v664_v23 }
 0x305   : > { %1058 = vmatprep.subr.mxu1 %v637_v30 }
 0x306   : > { %v667_v26 = vrot.slane %v666_v25, 1 }
 0x308   : > { %1059 = vmatpush3.xpose.msra.mxu1 %v637_v30  ;;  %v668_v28 = vadd.f32 %v667_v26, %v666_v25 }
 0x309   : > { %1060 = vmatprep.subr.mxu1 %v636_v17 }
 0x30a   : > { %669 = vst [vmem:[%s206_s15] sm:$0x1] %v668_v28 }
 0x30c   : > { %1061 = vmatpush3.xpose.msra.mxu1 %v636_v17 }
 0x30d   : > { %1062 = vmatprep.subr.mxu1 %v635_v61 }
 0x310   : > { %1063 = vmatpush3.xpose.msra.mxu1 %v635_v61 }
 0x311   : > { %1064 = vmatprep.subr.mxu1 %v634_v58 }
 0x314   : > { %1065 = vmatpush3.xpose.msra.mxu1 %v634_v58 }
 0x315   : > { %1066 = vmatprep.subr.mxu1 %v633_v55 }
 0x318   : > { %1067 = vmatpush3.xpose.msra.mxu1 %v633_v55 }
 0x319   : > { %1068 = vmatprep.subr.mxu1 %v632_v56 }
 0x31c   : > { %1069 = vmatpush3.xpose.msra.mxu1 %v632_v56 }
 0x31f   : > { %1071 = vmatmul.mubr.f32.vlgmr.msra.gmra.mxu1 %v1318_v31 }
 0x320   : > { %1073 = vmatprep.mubr.f32.mxu1 %v1322_v35 }
 0x323   : > { %1074 = vmatmul.mubr.f32.gmra.mxu1 %v1326_v37 }
 0x324   : > { %1076 = vmatprep.mubr.f32.mxu1 %v1293_v1 }
 0x327   : > { %1077 = vmatmul.mubr.f32.gmra.mxu1 %v1296_v2 }
 0x328   : > { %1079 = vmatprep.mubr.f32.mxu1 %v1299_v4 }
 0x32b   : > { %1080 = vmatmul.mubr.f32.gmra.mxu1 %v1302_v5 }
 0x3df   : > { %v1072_v29 = vpop.f32.mrf.mxu1 }
 0x3e0   : > { %776 = vst [vmem:[%s1290_s18 + $0x8] sm:$0xff] %v1072_v29 }
 0x3e1   : > { %v736_v32 = vpop.f32.mrf.mxu1 }
 0x3e2   : > { %775 = vst [vmem:[%s1290_s18] sm:$0xff] %v736_v32 }
 0x3e3   : > { %v1075_v31 = vpop.f32.mrf.mxu1 }
 0x3e4   : > { %778 = vst [vmem:[%s1290_s18 + $0x18] sm:$0xff] %v1075_v31 }
 0x3e5   : > { %v746_v35 = vpop.f32.mrf.mxu1 }
 0x3e6   : > { %777 = vst [vmem:[%s1290_s18 + $0x10] sm:$0xff] %v746_v35 }
 0x3e7   : > { %v1078_v37 = vpop.f32.mrf.mxu1 }
 0x3e8   : > { %780 = vst [vmem:[%s1290_s18 + $0x28] sm:$0xff] %v1078_v37 }
 0x3e9   : > { %v756_v33 = vpop.f32.mrf.mxu1 }
 0x3ea   : > { %779 = vst [vmem:[%s1290_s18 + $0x20] sm:$0xff] %v756_v33 }
 0x3eb   : > { %v1081_v1 = vpop.f32.mrf.mxu1 }
 0x3ec   : > { %782 = vst [vmem:[%s1290_s18 + $0x38] sm:$0xff] %v1081_v1 }
 0x3ed   : > { %v766_v2 = vpop.f32.mrf.mxu1 }
 0x3ee   : > { %781 = vst [vmem:[%s1290_s18 + $0x30] sm:$0xff] %v766_v2 }
 0x3ef PF: > { %s26_s1 = sadd.s32 1, %s1196_s1  }
 0x3f0   : > { %p23_p9 = scmp.ge.s32.totalorder %s26_s1, 4  }
 0x3f2   :  { %25 = sbr.rel (!%p23_p9) target bundleno = 26 (0x1a), region = 131 }

</bundles_post_ra>
